<compile_context>
chip_gen: v7x
topology: tpu7x:2x2x1
jax: 0.10.0
libtpu: 0.0.40
codegen_flags: <defaults>
</compile_context>

<pallas_src>
import jax
import jax.numpy as jnp
from jax.experimental import pallas as pl
from jax.experimental.pallas import tpu as pltpu


# TODO(synk): reference Xception.forward is `pass`; the full entry/middle/exit-flow
# architecture is not defined in the source, so only the separable-conv block
# (the Xception hot path) is implemented here.
class Xception:
    """Faithful stub of the reference module (forward returns None)."""

    def __init__(self, output_stride, batch_norm, pretrain):
        del output_stride, batch_norm, pretrain

    def forward(self, x):
        # reference body is `pass`
        return None


_LANE = 128  # TPU lane width: channel dims are padded to multiples of this.


def _round_up(x, m):
    return (x + m - 1) // m * m


def _sepconv_block_kernel(xpad_ref, w_ref, bias_ref, out_ref):
    """One (image, Cout-block) tile per grid step.

    xpad_ref : (1, H+2, W+2, Cin_p)  bf16, zero-padded (3x3 halo + channel pad)
    w_ref    : (9, Cin_p, CB)        bf16, fused depthwise*pointwise*BN-scale taps
    bias_ref : (1, CB)               f32, folded BN bias
    out_ref  : (1, H, W, CB)         f32
    """
    H = out_ref.shape[1]
    W = out_ref.shape[2]
    cout = out_ref.shape[3]

    # Upcast once; slicing/reshaping f32 values avoids packed-dtype relayouts,
    # the MXU inputs are re-packed to bf16 per tap (cheap VPU op, off MXU path).
    xp = xpad_ref[0].astype(jnp.float32)           # (H+2, W+2, Cin_p)
    cin = xp.shape[-1]

    # 9 accumulated MXU matmuls: (H*W, Cin_p) @ (Cin_p, CB), f32 accumulation.
    acc = jnp.zeros((H * W, cout), jnp.float32)
    t = 0
    for dy in range(3):
        for dx in range(3):
            patch = xp[dy:dy + H, dx:dx + W, :].reshape(H * W, cin)
            acc = acc + jnp.dot(patch.astype(jnp.bfloat16), w_ref[t],
                                preferred_element_type=jnp.float32)
            t += 1

    # Folded-BN bias + ReLU (scale already folded into w_ref columns).
    y = jnp.maximum(acc + bias_ref[...], 0.0)
    out_ref[0] = y.reshape(H, W, cout).astype(out_ref.dtype)


def _prepare(x_nchw, dw, pw, bn_scale, bn_bias):
    """Shared wrapper-side preprocessing (layout, padding, weight fusion)."""
    N, Cin, H, W = x_nchw.shape
    Cout = pw.shape[1]
    Cin_p = _round_up(Cin, _LANE)
    Cout_p = _round_up(Cout, _LANE)

    # NCHW -> NHWC (channels on the 128-lane axis).
    # TODO(synk): if the surrounding model stays NHWC between blocks, drop this
    # transpose pair entirely (it is pure layout traffic repeated per block).
    x = jnp.transpose(x_nchw, (0, 2, 3, 1))

    # Single pad: 3x3 SAME spatial halo + channel pad to lane-dense 128 multiple.
    # TODO(synk): for real Xception entry-flow sizes, replace the wrapper pad with
    # in-kernel halo handling + spatial row tiling (manual DMA) to bound VMEM.
    xpad = jnp.pad(
        x, ((0, 0), (1, 1), (1, 1), (0, Cin_p - Cin))).astype(jnp.bfloat16)

    # Fold BN scale into the pointwise weight and fuse depthwise x pointwise
    # per tap:  W_tap[dy,dx] = diag(dw[dy,dx]) @ (pw * scale)  -> (Cin, Cout)
    # so the entire block becomes 9 MXU matmuls (no VPU depthwise stage).
    pw_scaled = pw * bn_scale.reshape(1, Cout)                       # (Cin, Cout)
    w_fused = dw.reshape(9, Cin, 1) * pw_scaled.reshape(1, Cin, Cout)  # (9,Cin,Cout)
    w_fused = jnp.pad(
        w_fused, ((0, 0), (0, Cin_p - Cin), (0, Cout_p - Cout))).astype(jnp.bfloat16)

    bias = jnp.pad(bn_bias.reshape(1, Cout),
                   ((0, 0), (0, Cout_p - Cout))).astype(jnp.float32)

    dims = (N, H, W, Cin, Cout, Cin_p, Cout_p)
    return xpad, w_fused, bias, dims


def sepconv_block(x_nchw, dw, pw, bn_scale, bn_bias):
    """Depthwise-separable 3x3 conv + folded BN + ReLU. NCHW in/out (PyTorch)."""
    xpad, w_fused, bias, dims = _prepare(x_nchw, dw, pw, bn_scale, bn_bias)
    N, H, W, Cin, Cout, Cin_p, Cout_p = dims

    grid = (N, Cout_p // _LANE)
    out_nhwc = pl.pallas_call(
        _sepconv_block_kernel,
        out_shape=jax.ShapeDtypeStruct((N, H, W, Cout_p), jnp.float32),
        grid=grid,
        in_specs=[
            pl.BlockSpec((1, H + 2, W + 2, Cin_p), lambda n, j: (n, 0, 0, 0)),
            pl.BlockSpec((9, Cin_p, _LANE), lambda n, j: (0, 0, j)),
            pl.BlockSpec((1, _LANE), lambda n, j: (0, j)),
        ],
        out_specs=pl.BlockSpec((1, H, W, _LANE), lambda n, j: (n, 0, 0, j)),
        compiler_params=pltpu.CompilerParams(
            dimension_semantics=("parallel", "parallel"),
            vmem_limit_bytes=64 * 1024 * 1024),
    )(xpad, w_fused, bias)

    out_nhwc = out_nhwc[..., :Cout]                   # drop Cout channel padding
    return jnp.transpose(out_nhwc, (0, 3, 1, 2))      # NHWC -> NCHW


def _reference_block(x_nchw, dw, pw, bn_scale, bn_bias):
    """Pure-JAX reference using the same bf16-cast fused weights (f32 math)."""
    xpad, w_fused, bias, dims = _prepare(x_nchw, dw, pw, bn_scale, bn_bias)
    N, H, W, Cin, Cout, Cin_p, Cout_p = dims

    xp = xpad.astype(jnp.float32)
    wf = w_fused.astype(jnp.float32)
    acc = jnp.zeros((N, H, W, Cout_p), jnp.float32)
    t = 0
    for dy in range(3):
        for dx in range(3):
            acc = acc + jnp.einsum("nhwc,cd->nhwd",
                                   xp[:, dy:dy + H, dx:dx + W, :], wf[t])
            t += 1
    y = jnp.maximum(acc + bias[0], 0.0)
    return jnp.transpose(y[..., :Cout], (0, 3, 1, 2))


if __name__ == "__main__":
    key = jax.random.PRNGKey(0)
    k_x, k_dw, k_pw, k_g, k_b = jax.random.split(key, 5)

    # Small shapes consistent with an NCHW conv backbone input.
    N, Cin, H, W = 2, 8, 16, 16
    Cout = 16

    x = jax.random.normal(k_x, (N, Cin, H, W), jnp.float32)

    # Deterministic synthetic parameters (no checkpoint loading).
    dw = 0.1 * jax.random.normal(k_dw, (3, 3, Cin), jnp.float32)     # depthwise 3x3
    pw = 0.1 * jax.random.normal(k_pw, (Cin, Cout), jnp.float32)     # pointwise 1x1
    gamma = 1.0 + 0.1 * jax.random.normal(k_g, (Cout,), jnp.float32)
    beta = 0.1 * jax.random.normal(k_b, (Cout,), jnp.float32)
    running_mean = jnp.zeros((Cout,), jnp.float32)
    running_var = jnp.ones((Cout,), jnp.float32)
    eps = 1e-5

    inv_std = gamma / jnp.sqrt(running_var + eps)
    bn_scale = inv_std                                   # (Cout,)
    bn_bias = beta - running_mean * inv_std              # (Cout,)

    y = sepconv_block(x, dw, pw, bn_scale, bn_bias)
    y = jax.block_until_ready(y)

    y_ref = _reference_block(x, dw, pw, bn_scale, bn_bias)
    assert y.shape == (N, Cout, H, W)
    assert jnp.allclose(y, y_ref, atol=1e-3, rtol=1e-3)

    # Stub-semantics fidelity: the reference forward returns None.
    model = Xception(output_stride=16, batch_norm=None, pretrain=False)
    assert model.forward(x) is None

    print("KERNEL_OK")
</pallas_src>

<mosaic_0001>
module attributes {stable_mosaic.version = 11 : i64} {
  func.func @_sepconv_block_kernel(%arg0: i32, %arg1: i32, %arg2: memref<1x18x18x128xbf16, #tpu.memory_space<vmem>>, %arg3: memref<9x128x128xbf16, #tpu.memory_space<vmem>>, %arg4: memref<1x128xf32, #tpu.memory_space<vmem>>, %arg5: memref<1x16x16x128xf32, #tpu.memory_space<vmem>>) attributes {dimension_semantics = [#tpu.dimension_semantics<parallel>, #tpu.dimension_semantics<parallel>], iteration_bounds = array<i64: 2, 1>, scalar_prefetch = 0 : i64, scratch_operands = 0 : i64, tpu.core_type = #tpu.core_type<tc>, window_params = [{transform_indices = @transform_0, window_bounds = array<i64: 1, 18, 18, 128>}, {transform_indices = @transform_1, window_bounds = array<i64: 9, 128, 128>}, {transform_indices = @transform_2, window_bounds = array<i64: 1, 128>}, {transform_indices = @transform_3, window_bounds = array<i64: 1, 16, 16, 128>}]} {
    %c0 = arith.constant 0 : index
    %c0_0 = arith.constant 0 : index
    %c0_1 = arith.constant 0 : index
    %c0_2 = arith.constant 0 : index
    %0 = vector.load %arg2[%c0, %c0_0, %c0_1, %c0_2] : memref<1x18x18x128xbf16, #tpu.memory_space<vmem>>, vector<1x18x18x128xbf16>
    %1 = vector.shape_cast %0 : vector<1x18x18x128xbf16> to vector<18x18x128xbf16>
    %2 = arith.extf %1 : vector<18x18x128xbf16> to vector<18x18x128xf32>
    %cst = arith.constant 0.000000e+00 : f32
    %3 = vector.broadcast %cst : f32 to vector<256x128xf32>
    %4 = vector.extract_strided_slice %2 {offsets = [0, 0, 0], sizes = [16, 16, 128], strides = [1, 1, 1]} : vector<18x18x128xf32> to vector<16x16x128xf32>
    %5 = vector.shape_cast %4 : vector<16x16x128xf32> to vector<256x128xf32>
    %6 = arith.truncf %5 : vector<256x128xf32> to vector<256x128xbf16>
    %c0_3 = arith.constant 0 : index
    %c0_4 = arith.constant 0 : index
    %c0_5 = arith.constant 0 : index
    %7 = vector.load %arg3[%c0_3, %c0_4, %c0_5] : memref<9x128x128xbf16, #tpu.memory_space<vmem>>, vector<1x128x128xbf16>
    %8 = vector.shape_cast %7 : vector<1x128x128xbf16> to vector<128x128xbf16>
    %cst_6 = arith.constant dense<0.000000e+00> : vector<256x128xf32>
    %9 = tpu.matmul %6, %8, %cst_6 {dimension_numbers = #tpu.dot_dimension_numbers<[1], [0], [0], [1], [0, 0, 1, 1], [], []>} : vector<256x128xbf16>, vector<128x128xbf16>, vector<256x128xf32> -> vector<256x128xf32>
    %10 = arith.addf %3, %9 : vector<256x128xf32>
    %11 = vector.extract_strided_slice %2 {offsets = [0, 1, 0], sizes = [16, 16, 128], strides = [1, 1, 1]} : vector<18x18x128xf32> to vector<16x16x128xf32>
    %12 = vector.shape_cast %11 : vector<16x16x128xf32> to vector<256x128xf32>
    %13 = arith.truncf %12 : vector<256x128xf32> to vector<256x128xbf16>
    %c1 = arith.constant 1 : index
    %c0_7 = arith.constant 0 : index
    %c0_8 = arith.constant 0 : index
    %14 = vector.load %arg3[%c1, %c0_7, %c0_8] : memref<9x128x128xbf16, #tpu.memory_space<vmem>>, vector<1x128x128xbf16>
    %15 = vector.shape_cast %14 : vector<1x128x128xbf16> to vector<128x128xbf16>
    %cst_9 = arith.constant dense<0.000000e+00> : vector<256x128xf32>
    %16 = tpu.matmul %13, %15, %cst_9 {dimension_numbers = #tpu.dot_dimension_numbers<[1], [0], [0], [1], [0, 0, 1, 1], [], []>} : vector<256x128xbf16>, vector<128x128xbf16>, vector<256x128xf32> -> vector<256x128xf32>
    %17 = arith.addf %10, %16 : vector<256x128xf32>
    %18 = vector.extract_strided_slice %2 {offsets = [0, 2, 0], sizes = [16, 16, 128], strides = [1, 1, 1]} : vector<18x18x128xf32> to vector<16x16x128xf32>
    %19 = vector.shape_cast %18 : vector<16x16x128xf32> to vector<256x128xf32>
    %20 = arith.truncf %19 : vector<256x128xf32> to vector<256x128xbf16>
    %c2 = arith.constant 2 : index
    %c0_10 = arith.constant 0 : index
    %c0_11 = arith.constant 0 : index
    %21 = vector.load %arg3[%c2, %c0_10, %c0_11] : memref<9x128x128xbf16, #tpu.memory_space<vmem>>, vector<1x128x128xbf16>
    %22 = vector.shape_cast %21 : vector<1x128x128xbf16> to vector<128x128xbf16>
    %cst_12 = arith.constant dense<0.000000e+00> : vector<256x128xf32>
    %23 = tpu.matmul %20, %22, %cst_12 {dimension_numbers = #tpu.dot_dimension_numbers<[1], [0], [0], [1], [0, 0, 1, 1], [], []>} : vector<256x128xbf16>, vector<128x128xbf16>, vector<256x128xf32> -> vector<256x128xf32>
    %24 = arith.addf %17, %23 : vector<256x128xf32>
    %25 = vector.extract_strided_slice %2 {offsets = [1, 0, 0], sizes = [16, 16, 128], strides = [1, 1, 1]} : vector<18x18x128xf32> to vector<16x16x128xf32>
    %26 = vector.shape_cast %25 : vector<16x16x128xf32> to vector<256x128xf32>
    %27 = arith.truncf %26 : vector<256x128xf32> to vector<256x128xbf16>
    %c3 = arith.constant 3 : index
    %c0_13 = arith.constant 0 : index
    %c0_14 = arith.constant 0 : index
    %28 = vector.load %arg3[%c3, %c0_13, %c0_14] : memref<9x128x128xbf16, #tpu.memory_space<vmem>>, vector<1x128x128xbf16>
    %29 = vector.shape_cast %28 : vector<1x128x128xbf16> to vector<128x128xbf16>
    %cst_15 = arith.constant dense<0.000000e+00> : vector<256x128xf32>
    %30 = tpu.matmul %27, %29, %cst_15 {dimension_numbers = #tpu.dot_dimension_numbers<[1], [0], [0], [1], [0, 0, 1, 1], [], []>} : vector<256x128xbf16>, vector<128x128xbf16>, vector<256x128xf32> -> vector<256x128xf32>
    %31 = arith.addf %24, %30 : vector<256x128xf32>
    %32 = vector.extract_strided_slice %2 {offsets = [1, 1, 0], sizes = [16, 16, 128], strides = [1, 1, 1]} : vector<18x18x128xf32> to vector<16x16x128xf32>
    %33 = vector.shape_cast %32 : vector<16x16x128xf32> to vector<256x128xf32>
    %34 = arith.truncf %33 : vector<256x128xf32> to vector<256x128xbf16>
    %c4 = arith.constant 4 : index
    %c0_16 = arith.constant 0 : index
    %c0_17 = arith.constant 0 : index
    %35 = vector.load %arg3[%c4, %c0_16, %c0_17] : memref<9x128x128xbf16, #tpu.memory_space<vmem>>, vector<1x128x128xbf16>
    %36 = vector.shape_cast %35 : vector<1x128x128xbf16> to vector<128x128xbf16>
    %cst_18 = arith.constant dense<0.000000e+00> : vector<256x128xf32>
    %37 = tpu.matmul %34, %36, %cst_18 {dimension_numbers = #tpu.dot_dimension_numbers<[1], [0], [0], [1], [0, 0, 1, 1], [], []>} : vector<256x128xbf16>, vector<128x128xbf16>, vector<256x128xf32> -> vector<256x128xf32>
    %38 = arith.addf %31, %37 : vector<256x128xf32>
    %39 = vector.extract_strided_slice %2 {offsets = [1, 2, 0], sizes = [16, 16, 128], strides = [1, 1, 1]} : vector<18x18x128xf32> to vector<16x16x128xf32>
    %40 = vector.shape_cast %39 : vector<16x16x128xf32> to vector<256x128xf32>
    %41 = arith.truncf %40 : vector<256x128xf32> to vector<256x128xbf16>
    %c5 = arith.constant 5 : index
    %c0_19 = arith.constant 0 : index
    %c0_20 = arith.constant 0 : index
    %42 = vector.load %arg3[%c5, %c0_19, %c0_20] : memref<9x128x128xbf16, #tpu.memory_space<vmem>>, vector<1x128x128xbf16>
    %43 = vector.shape_cast %42 : vector<1x128x128xbf16> to vector<128x128xbf16>
    %cst_21 = arith.constant dense<0.000000e+00> : vector<256x128xf32>
    %44 = tpu.matmul %41, %43, %cst_21 {dimension_numbers = #tpu.dot_dimension_numbers<[1], [0], [0], [1], [0, 0, 1, 1], [], []>} : vector<256x128xbf16>, vector<128x128xbf16>, vector<256x128xf32> -> vector<256x128xf32>
    %45 = arith.addf %38, %44 : vector<256x128xf32>
    %46 = vector.extract_strided_slice %2 {offsets = [2, 0, 0], sizes = [16, 16, 128], strides = [1, 1, 1]} : vector<18x18x128xf32> to vector<16x16x128xf32>
    %47 = vector.shape_cast %46 : vector<16x16x128xf32> to vector<256x128xf32>
    %48 = arith.truncf %47 : vector<256x128xf32> to vector<256x128xbf16>
    %c6 = arith.constant 6 : index
    %c0_22 = arith.constant 0 : index
    %c0_23 = arith.constant 0 : index
    %49 = vector.load %arg3[%c6, %c0_22, %c0_23] : memref<9x128x128xbf16, #tpu.memory_space<vmem>>, vector<1x128x128xbf16>
    %50 = vector.shape_cast %49 : vector<1x128x128xbf16> to vector<128x128xbf16>
    %cst_24 = arith.constant dense<0.000000e+00> : vector<256x128xf32>
    %51 = tpu.matmul %48, %50, %cst_24 {dimension_numbers = #tpu.dot_dimension_numbers<[1], [0], [0], [1], [0, 0, 1, 1], [], []>} : vector<256x128xbf16>, vector<128x128xbf16>, vector<256x128xf32> -> vector<256x128xf32>
    %52 = arith.addf %45, %51 : vector<256x128xf32>
    %53 = vector.extract_strided_slice %2 {offsets = [2, 1, 0], sizes = [16, 16, 128], strides = [1, 1, 1]} : vector<18x18x128xf32> to vector<16x16x128xf32>
    %54 = vector.shape_cast %53 : vector<16x16x128xf32> to vector<256x128xf32>
    %55 = arith.truncf %54 : vector<256x128xf32> to vector<256x128xbf16>
    %c7 = arith.constant 7 : index
    %c0_25 = arith.constant 0 : index
    %c0_26 = arith.constant 0 : index
    %56 = vector.load %arg3[%c7, %c0_25, %c0_26] : memref<9x128x128xbf16, #tpu.memory_space<vmem>>, vector<1x128x128xbf16>
    %57 = vector.shape_cast %56 : vector<1x128x128xbf16> to vector<128x128xbf16>
    %cst_27 = arith.constant dense<0.000000e+00> : vector<256x128xf32>
    %58 = tpu.matmul %55, %57, %cst_27 {dimension_numbers = #tpu.dot_dimension_numbers<[1], [0], [0], [1], [0, 0, 1, 1], [], []>} : vector<256x128xbf16>, vector<128x128xbf16>, vector<256x128xf32> -> vector<256x128xf32>
    %59 = arith.addf %52, %58 : vector<256x128xf32>
    %60 = vector.extract_strided_slice %2 {offsets = [2, 2, 0], sizes = [16, 16, 128], strides = [1, 1, 1]} : vector<18x18x128xf32> to vector<16x16x128xf32>
    %61 = vector.shape_cast %60 : vector<16x16x128xf32> to vector<256x128xf32>
    %62 = arith.truncf %61 : vector<256x128xf32> to vector<256x128xbf16>
    %c8 = arith.constant 8 : index
    %c0_28 = arith.constant 0 : index
    %c0_29 = arith.constant 0 : index
    %63 = vector.load %arg3[%c8, %c0_28, %c0_29] : memref<9x128x128xbf16, #tpu.memory_space<vmem>>, vector<1x128x128xbf16>
    %64 = vector.shape_cast %63 : vector<1x128x128xbf16> to vector<128x128xbf16>
    %cst_30 = arith.constant dense<0.000000e+00> : vector<256x128xf32>
    %65 = tpu.matmul %62, %64, %cst_30 {dimension_numbers = #tpu.dot_dimension_numbers<[1], [0], [0], [1], [0, 0, 1, 1], [], []>} : vector<256x128xbf16>, vector<128x128xbf16>, vector<256x128xf32> -> vector<256x128xf32>
    %66 = arith.addf %59, %65 : vector<256x128xf32>
    %c0_31 = arith.constant 0 : index
    %c0_32 = arith.constant 0 : index
    %67 = vector.load %arg4[%c0_31, %c0_32] : memref<1x128xf32, #tpu.memory_space<vmem>>, vector<1x128xf32>
    %68 = vector.broadcast %67 : vector<1x128xf32> to vector<256x128xf32>
    %69 = arith.addf %66, %68 : vector<256x128xf32>
    %cst_33 = arith.constant 0.000000e+00 : f32
    %70 = vector.broadcast %cst_33 : f32 to vector<256x128xf32>
    %71 = arith.maximumf %69, %70 : vector<256x128xf32>
    %72 = vector.shape_cast %71 : vector<256x128xf32> to vector<16x16x128xf32>
    %c0_34 = arith.constant 0 : index
    %c0_35 = arith.constant 0 : index
    %c0_36 = arith.constant 0 : index
    %c0_37 = arith.constant 0 : index
    %73 = vector.load %arg5[%c0_34, %c0_35, %c0_36, %c0_37] : memref<1x16x16x128xf32, #tpu.memory_space<vmem>>, vector<1x16x16x128xf32>
    %74 = vector.shape_cast %73 : vector<1x16x16x128xf32> to vector<16x16x128xf32>
    %75 = vector.shape_cast %72 : vector<16x16x128xf32> to vector<1x16x16x128xf32>
    tpu.vector_store %arg5[%c0_34, %c0_35, %c0_36, %c0_37], %75 {strides = array<i32>} : memref<1x16x16x128xf32, #tpu.memory_space<vmem>>, vector<1x16x16x128xf32>,
    return
  }
  func.func @transform_0(%arg0: i32, %arg1: i32) -> (i32, i32, i32, i32) {
    %c0_i32 = arith.constant 0 : i32
    %c0_i32_0 = arith.constant 0 : i32
    %c0_i32_1 = arith.constant 0 : i32
    %c0_i32_2 = arith.constant 0 : i32
    return %arg0, %c0_i32, %c0_i32_0, %c0_i32_1 : i32, i32, i32, i32
  }
  func.func @transform_1(%arg0: i32, %arg1: i32) -> (i32, i32, i32) {
    %c0_i32 = arith.constant 0 : i32
    %c0_i32_0 = arith.constant 0 : i32
    %c0_i32_1 = arith.constant 0 : i32
    return %c0_i32, %c0_i32_0, %arg1 : i32, i32, i32
  }
  func.func @transform_2(%arg0: i32, %arg1: i32) -> (i32, i32) {
    %c0_i32 = arith.constant 0 : i32
    %c0_i32_0 = arith.constant 0 : i32
    return %c0_i32, %arg1 : i32, i32
  }
  func.func @transform_3(%arg0: i32, %arg1: i32) -> (i32, i32, i32, i32) {
    %c0_i32 = arith.constant 0 : i32
    %c0_i32_0 = arith.constant 0 : i32
    %c0_i32_1 = arith.constant 0 : i32
    return %arg0, %c0_i32, %c0_i32_0, %arg1 : i32, i32, i32, i32
  }
}

</mosaic_0001>

<bundles_post_ra>
// kernel: tpu_custom_call.1
= control target key start
LH: loop header
LB: loop body
LE: loop exit
PB: predicated region body
PF: predicated region fallthrough
CT: control target
= control target key end

     0   :  { %8 = vsyncpa [#allocation3], 0  ;;  %s5637_s0 = inlined_call_operand.hbm [shape: bf16[2,18,18,128], index: 0, kind: input, shape index: {}]   ;;  %s5638_s1 = inlined_call_operand.hbm [shape: bf16[9,128,128], index: 1, kind: input, shape index: {}]   ;;  %s5639_s2 = inlined_call_operand.hbm [shape: f32[1,128], index: 2, kind: input, shape index: {}]   ;;  %s5640_s3 = inlined_call_operand.hbm [shape: f32[2,16,16,128], index: 3, kind: output, shape index: {}]  }
   0x1   :  { %10 = vsyncpa [#allocation3 + $0x1], 0 }
   0x2   :  { %11 = vsyncpa [#allocation6], 0 }
   0x3   :  { %12 = vsyncpa [#allocation4], 0 }
   0x4   :  { %14 = vsyncpa [#allocation4 + $0x1], 0  ;;  %s4632_s12 = smov 0   ;;  %s4634_s13 = smov 0  }
   0x5   :  { %s4636_s14 = smov 0   ;;  %s4638_s15 = smov 0  }
   0x6   :  { %s4640_s16 = smov 0   ;;  %s4642_s17 = smov 0  }
   0x7 LB: > { %s3196_s18 = sadd.s32 4294967295, %s4602_s17   ;;  %s3197_s19 = sadd.s32 4294967294, %s4602_s17   ;;  %s4602_s17 = sphi %s4642_s17, %s20_s17   ;;  %s4598_s16 = sphi %s4640_s16, %s5743_s16   ;;  %s4594_s15 = sphi %s4638_s15, %s5742_s15   ;;  %s4590_s14 = sphi %s4636_s14, %s5741_s14   ;;  %s4586_s13 = sphi %s4634_s13, %s5740_s13   ;;  %s4582_s12 = sphi %s4632_s12, %s5739_s12  }
   0x8   : > { %p52_p0 = scmp.ne.s32.totalorder %s4586_s13, %s4582_s12  ;;  %p4666_p1 = scmp.eq.s32.totalorder %s3196_s18, 0 }
   0x9   : > { %p4670_p2 = scmp.eq.s32.totalorder %s3196_s18, 1  ;;  %p136_p3 = scmp.eq.s32.totalorder %s3197_s19, 1 }
   0xa   : > { %s5683_s20 = scalar_select %p4666_p1, 1, 0 }
   0xb   : > { %p4676_p4 = por %p4666_p1, %p52_p0  ;;  %p3198_p5 = scmp.ge.s32.totalorder %s4602_s17, 1 }
   0xc   : > { %p4681_p6 = por %p136_p3, %p52_p0  ;;  %p143_p7 = scmp.lt.s32.totalorder %s4602_s17, 3 }
   0xd   : > { %s5685_s22 = scalar_select %p4676_p4, 1, 0 }
   0xe   : > { %s5686_s23 = scalar_select %p4681_p6, 1, 0 }
   0xf   : > { %p4686_p8 = pnand %p3198_p5, %p143_p7  ;;  %s4604_s25 = smov [#allocation5]  }
  0x10   : > { %s157_s26 = sshll.u32 %s4604_s25, 4  ;;  %s4605_s28 = smov [#allocation7]   ;;  %s4690_s26 = int_to_ptr.vmem [resolvable:$true] %s157_s26 }
  0x11   : > { %p4239_p9 = pneg %p4686_p8  ;;  %s173_s29 = sshll.u32 %s4605_s28, 4  ;;  %s4701_s29 = int_to_ptr.vmem [resolvable:$true] %s173_s29 }
  0x12   : > { %s4430_s5 = scalar_lea.hbm %s5638_s1, 9216 }
  0x13   : > { %p4697_p11 = pnand %p4239_p9, %p4666_p1  ;;  %p4431_p12 = scmp.ne.s32.totalorder %s5638_s1, %s4430_s5 }
  0x14   : > { %p4437_p5 = scmp.lt.u32.totalorder %s4430_s5, %s5638_s1 }
  0x15   : > { %p4432_p13 = pneg %p4697_p11 }
  0x17   : > { %p4433_p0 = pnand %p4432_p13, %p4431_p12 }
  0x19   : > { %p4434_p3 = pneg %p4433_p0 }
  0x1b   : > { %p4439_p7 = pnand %p4437_p5, %p4434_p3 }
  0x1d   : > { %4442 = shalt.err (!%p4439_p7)
}
  0x1e   : > { %s4443_s10 = scalar_lea.vmem %s4690_s26, 9216  ;;  %p4451_p1 = scmp.lt.s32.totalorder %s4690_s26, %s4690_s26 }
  0x1f   : > { %p4444_p9 = scmp.ne.s32.totalorder %s4690_s26, %s4443_s10  ;;  %p4452_p12 = scmp.lt.s32.totalorder %s4443_s10, %s4443_s10 }
  0x21   : > { %p4446_p10 = pnand %p4444_p9, %p4432_p13  ;;  %p4453_p0 = por %p4452_p12, %p4451_p1 }
  0x23   : > { %p4447_p6 = pneg %p4446_p10 }
  0x25   : > { %p4454_p4 = pnand %p4453_p0, %p4447_p6 }
  0x27   : > { %4457 = shalt.err (!%p4454_p4)
}
  0x28   : > { %s4606_s11 = smov 64   ;;  %s4607_s18 = smov 4  }
  0x29   : > { %4242 = dma.hbm_to_vmem [thread:$0]  (!%p4697_p11), %s5638_s1, 9216, %s4690_s26, [#allocation6], %s4606_s11, %s4606_s11, %s4607_s18  }
  0x2a   : > { %s4458_s4 = scalar_lea.hbm %s5639_s2, 16 }
  0x2b   : > { %p4459_p1 = scmp.ne.s32.totalorder %s5639_s2, %s4458_s4  ;;  %p4465_p10 = scmp.lt.u32.totalorder %s4458_s4, %s5639_s2 }
  0x2d   : > { %p4461_p4 = pnand %p4459_p1, %p4432_p13 }
  0x2f   : > { %p4462_p6 = pneg %p4461_p4 }
  0x31   : > { %p4467_p3 = pnand %p4465_p10, %p4462_p6 }
  0x33   : > { %4470 = shalt.err (!%p4467_p3)
}
  0x34   : > { %s4471_s26 = scalar_lea.vmem %s4701_s29, 16  ;;  %s4478_s9 = scalar_lea.vmem %s4701_s29, 32 }
  0x35   : > { %p4472_p5 = scmp.ne.s32.totalorder %s4701_s29, %s4471_s26  ;;  %p4479_p12 = scmp.lt.s32.totalorder %s4701_s29, %s4701_s29 }
  0x36   : > { %p4480_p0 = scmp.lt.s32.totalorder %s4478_s9, %s4471_s26 }
  0x37   : > { %p4474_p7 = pnand %p4472_p5, %p4432_p13 }
  0x38   : > { %p4481_p1 = por %p4480_p0, %p4479_p12 }
  0x39   : > { %p4475_p9 = pneg %p4474_p7 }
  0x3b   : > { %p4482_p4 = pnand %p4481_p1, %p4475_p9 }
  0x3d   : > { %4485 = shalt.err (!%p4482_p4)
}
  0x3e   : > { %4245 = dma.hbm_to_vmem [thread:$0]  (!%p4697_p11), %s5639_s2, 16, %s4701_s29, [#allocation6]  }
  0x3f   : > { %s32_s25 = sadd.s32 1, %s4598_s16  ;;  %s39_s28 = sadd.s32 1, %s4590_s14 }
  0x40   : > { %p34_p13 = scmp.ge.s32.totalorder %s32_s25, 2  ;;  %p46_p6 = scmp.ne.s32.totalorder %s4590_s14, %s4586_s13 }
  0x41   : > { %p47_p10 = scmp.eq.s32.totalorder %s4602_s17, 0  ;;  %p4256_p3 = scmp.lt.s32.totalorder %s4602_s17, 2 }
  0x42   : > { %s5745_s25 = smov (%p34_p13, %s32_s25), 0  ;;  %p4769_p7 = por %p4670_p2, %p46_p6 }
  0x43   : > { %p48_p5 = por %p47_p10, %p46_p6  ;;  %s36_s30 = ssub.s32 %s4598_s16, %s5745_s25 }
  0x44   : > { %s5689_s27 = scalar_select %p4769_p7, 1, 0 }
  0x45   : > { %s184_s4 = sand.u32 1, %s4590_s14   ;;  %p37_p9 = scmp.eq.s32.totalorder %s36_s30, 0 }
  0x46   : > { %s4224_s29 = smul.u32 216, %s184_s4  ;;  %p4776_p11 = pnand %p4256_p3, %p48_p5 }
  0x47   : > { %s4781_s6 = scalar_select %p37_p9, %s4590_s14, %s39_s28  }
  0x48   : > { %s4225_s7 = smul.u32 3456, %s4598_s16  ;;  %s188_s8 = scalar_lea.vmem [#allocation2], %s4224_s29 }
  0x49   : > { %s195_s26 = sshll.u32 %s188_s8, 4  ;;  %s4791_s19 = scalar_lea.sflag [#allocation3], %s184_s4  ;;  %s4789_s26 = int_to_ptr.vmem [resolvable:$true] %s195_s26 }
  0x4a   : > { %s4787_s10 = scalar_lea.hbm %s5637_s0, %s4225_s7  ;;  %p4488_p12 = pneg %p4776_p11 }
  0x4b   : > { %s4486_s30 = scalar_lea.hbm %s4787_s10, 3456  ;;  %s4491_s7 = scalar_lea.hbm %s5637_s0, 6912 }
  0x4c   : > { %p4487_p2 = scmp.ne.s32.totalorder %s4787_s10, %s4486_s30  ;;  %p4492_p4 = scmp.lt.u32.totalorder %s4787_s10, %s5637_s0 }
  0x4d   : > { %p4493_p13 = scmp.lt.u32.totalorder %s4491_s7, %s4486_s30  ;;  %p4495_p10 = scmp.lt.u32.totalorder %s4486_s30, %s4787_s10 }
  0x4e   : > { %p4489_p0 = pnand %p4488_p12, %p4487_p2 }
  0x4f   : > { %p4494_p6 = por %p4493_p13, %p4492_p4 }
  0x50   : > { %p4490_p1 = pneg %p4489_p0 }
  0x51   : > { %p4496_p3 = por %p4495_p10, %p4494_p6 }
  0x53   : > { %p4497_p5 = pnand %p4496_p3, %p4490_p1 }
  0x55   : > { %4500 = shalt.err (!%p4497_p5)
}
  0x56   : > { %s4501_s4 = scalar_lea.vmem %s4789_s26, 3456  ;;  %s4608_s9 = smov [#allocation2]  }
  0x57   : > { %p4502_p9 = scmp.ne.s32.totalorder %s4789_s26, %s4501_s4  ;;  %s4506_s28 = sshll.u32 %s4608_s9, 4  ;;  %s4507_s28 = int_to_ptr.vmem [resolvable:$false] %s4506_s28 }
  0x58   : > { %s4508_s29 = scalar_lea.vmem %s4507_s28, 6912  ;;  %p4509_p7 = scmp.lt.s32.totalorder %s4789_s26, %s4507_s28 }
  0x59   : > { %p4504_p2 = pnand %p4502_p9, %p4488_p12  ;;  %p4510_p4 = scmp.lt.s32.totalorder %s4508_s29, %s4501_s4 }
  0x5b   : > { %p4505_p0 = pneg %p4504_p2  ;;  %p4511_p13 = por %p4510_p4, %p4509_p7 }
  0x5d   : > { %p4512_p6 = pnand %p4511_p13, %p4505_p0 }
  0x5f   : > { %4515 = shalt.err (!%p4512_p6)
}
  0x60   : > { %4249 = dma.hbm_to_vmem [thread:$0]  (!%p4776_p11), %s4787_s10, 3456, %s4789_s26, %s4791_s19, %s4606_s11, %s4606_s11, %s4607_s18  }
  0x61   : > { %207 = sbr.rel (%p4686_p8) target bundleno = 662 (0x296), region = 32 }
  0x68   : > { %s4825_s30 = sand.u32 1, %s4586_s13   ;;  %p5691_p7 = scmp.ne.s32.totalorder %s5685_s22, 0 }
  0x69   : > { %s4226_s7 = smul.u32 216, %s4825_s30  ;;  %s210_s8 = scalar_lea.sflag [#allocation3], %s4825_s30 }
  0x6b   : > { %s4829_s21 = scalar_lea.vmem [#allocation2], %s4226_s7 }
  0x6c   : > { %4569 = dma.done.wait (%p5691_p7), %s210_s8, 3456  }
  0x6d   : > { %4571 = vsyncadd (%p5691_p7), %s210_s8, 4294963840  ;;  %p5692_p11 = scmp.ne.s32.totalorder %s5683_s20, 0 }
  0x6f   : > { %4573 = dma.done.wait (%p5692_p11), [#allocation6], 9232  }
  0x70   : > { %4575 = vsyncadd (%p5692_p11), [#allocation6], 4294958064  ;;  %v4314_v0 = vld [vmem:[#allocation5 + $0x40] sm:$0xff]   ;;  %v4316_v2 = vld [vmem:[#allocation5 + $0x48] sm:$0xff]   ;;  %vm433_vm0 = vcmask 1046528   ;;  %vm997_vm1 = vcmask 1045504  }
  0x71   : > { %v4315_v1 = vld [vmem:[#allocation5 + $0x100] sm:$0xff]   ;;  %3520 = vmatprep.subr.bf16.mxu1 %v4314_v0  ;;  %v4317_v3 = vld [vmem:[#allocation5 + $0x108] sm:$0xff]   ;;  %v4318_v4 = vld [vmem:[#allocation5 + $0x50] sm:$0xff]   ;;  %s3206_s20 = sshll.u32 %s4825_s30, 8  ;;  %s3303_s24 = sshll.u32 %s4594_s15, 12 }
  0x72   : > { %3712 = vmatprep.subr.bf16.mxu0 %v4315_v1  ;;  %3521 = vmatpush3.bf16.msra.mxu1 %v4314_v0  ;;  %v4319_v5 = vld [vmem:[#allocation5 + $0x110] sm:$0xff]   ;;  %v4320_v6 = vld [vmem:[#allocation5 + $0x58] sm:$0xff]   ;;  %v4322_v8 = vld [vmem:[#allocation5 + $0x60] sm:$0xff]   ;;  %s5515_s22 = scalar_lea.vmem [#allocation8], %s3206_s20  ;;  %s5583_s26 = scalar_lea.hbm %s5640_s3, %s3303_s24 }
  0x73   : > { %3713 = vmatpush3.bf16.msra.mxu0 %v4315_v1  ;;  %3522 = vmatprep.subr.bf16.mxu1 %v4316_v2  ;;  %v4321_v7 = vld [vmem:[#allocation5 + $0x118] sm:$0xff]   ;;  %v4323_v9 = vld [vmem:[#allocation5 + $0x120] sm:$0xff]   ;;  %v4324_v10 = vld [vmem:[#allocation5 + $0x68] sm:$0xff]   ;;  %s3090_s11 = sshll.u32 %s5515_s22, 4  ;;  %s3076_s15 = scalar_lea.sflag [#allocation4], %s4825_s30  ;;  %s5585_s11 = int_to_ptr.vmem [resolvable:$true] %s3090_s11 }
  0x74   : > { %3714 = vmatprep.subr.bf16.mxu0 %v4317_v3  ;;  %v4325_v11 = vld [vmem:[#allocation5 + $0x128] sm:$0xff]   ;;  %v4843_v13 = vld [vmem:[%s4829_s21 + $0x8] sm:$0x1]  ;;  %v4846_v14 = vld [vmem:[%s4829_s21 + $0xc] sm:$0xff]   ;;  %s4516_s10 = scalar_lea.vmem %s5585_s11, 4096  ;;  %p5736_p12 = scmp.ne.s32.totalorder %s5689_s27, 0 }
  0x75   : > { %v4840_v12 = vld [vmem:[%s4829_s21] sm:$0xff]   ;;  %v5645_v17 = vunpack.c.l.bf16 %v4843_v13  ;;  %v4852_v18 = vld [vmem:[%s4829_s21 + $0x14] sm:$0x1]  ;;  %v302_v19 = vunpack.c.l.bf16 %v4846_v14  ;;  %v303_v20 = vunpack.c.h.bf16 %v4846_v14  ;;  %v4858_v22 = vld [vmem:[%s4829_s21 + $0x18] sm:$0xff]   ;;  %p4517_p8 = scmp.ne.s32.totalorder %s5585_s11, %s4516_s10  ;;  %s4609_s19 = smov [#allocation8]  }
  0x76   : > { %3523 = vmatpush3.bf16.msra.mxu1 %v4316_v2  ;;  %v5647_v15 = vunpack.c.l.bf16 %v4840_v12  ;;  %v5646_v16 = vunpack.c.h.bf16 %v4840_v12  ;;  %v304_v21 = vunpack.c.l.bf16 %v4852_v18  ;;  %v4861_v23 = vld [vmem:[%s4829_s21 + $0x20] sm:$0x1]  ;;  %v305_v32 = vunpack.c.l.bf16 %v4858_v22  ;;  %v4881_v37 = vld [vmem:[%s4829_s21 + $0x24] sm:$0xff]   ;;  %v4886_v41 = vld [vmem:[%s4829_s21 + $0x2c] sm:$0x1]  ;;  %s4520_s4 = sshll.u32 %s4609_s19, 4  ;;  %s4521_s4 = int_to_ptr.vmem [resolvable:$false] %s4520_s4 }
  0x77   : > { %3715 = vmatpush3.bf16.msra.mxu0 %v4317_v3  ;;  %3524 = vmatprep.subr.bf16.mxu1 %v4318_v4  ;;  %v437_v26 = vrot.slane %v5645_v17, 1  ;;  %v439_v27 = vrot.slane %v302_v19, 1  ;;  %v4326_v28 = vld [vmem:[#allocation5 + $0x70] sm:$0xff]   ;;  %v440_v30 = vrot.slane %v303_v20, 1  ;;  %v306_v33 = vunpack.c.h.bf16 %v4858_v22  ;;  %v4328_v42 = vld [vmem:[#allocation5 + $0x78] sm:$0xff]   ;;  %v4331_v61 = vld [vmem:[#allocation5] sm:$0xff]   ;;  %p4518_p1 = pnand %p4517_p8, %p5736_p12  ;;  %p4523_p3 = scmp.lt.s32.totalorder %s5585_s11, %s4521_s4 }
  0x78   : > { %3716 = vmatprep.subr.bf16.mxu0 %v4319_v5  ;;  %v434_v24 = vrot.slane %v5647_v15, 1  ;;  %v435_v25 = vrot.slane %v5646_v16, 1  ;;  %v4327_v29 = vld [vmem:[#allocation5 + $0x130] sm:$0xff]   ;;  %v442_v31 = vrot.slane %v304_v21, 1  ;;  %v307_v36 = vunpack.c.l.bf16 %v4861_v23  ;;  %v4891_v45 = vld [vmem:[%s4829_s21 + $0x30] sm:$0xff]   ;;  %v5006_v16 = vld [vmem:[%s4829_s21 + $0x78] sm:$0xff]  }
  0x79   : > { %v441_v39 = vsel %vm433_vm0, %v439_v27, %v440_v30  ;;  %v444_v44 = vrot.slane %v305_v32, 1  ;;  %v445_v46 = vrot.slane %v306_v33, 1  ;;  %v308_v48 = vunpack.c.l.bf16 %v4881_v37  ;;  %v4900_v50 = vld [vmem:[%s4829_s21 + $0x38] sm:$0x1]  ;;  %v4329_v51 = vld [vmem:[#allocation5 + $0x138] sm:$0xff]   ;;  %v4910_v57 = vld [vmem:[%s4829_s21 + $0x3c] sm:$0xff]   ;;  %p4519_p10 = pneg %p4518_p1 }
  0x7a   : > { %3525 = vmatpush3.bf16.msra.mxu1 %v4318_v4  ;;  %v436_v34 = vsel %vm433_vm0, %v434_v24, %v435_v25  ;;  %v438_v35 = vsel %vm433_vm0, %v435_v25, %v437_v26  ;;  %v443_v40 = vsel %vm433_vm0, %v440_v30, %v442_v31  ;;  %v447_v47 = vrot.slane %v307_v36, 1  ;;  %v4916_v60 = vld [vmem:[%s4829_s21 + $0x44] sm:$0x1]  ;;  %v4332_v0 = vld [vmem:[#allocation5 + $0x140] sm:$0xff]   ;;  %s4522_s9 = scalar_lea.vmem %s4521_s4, 8192 }
  0x7b   : > { %3717 = vmatpush3.bf16.msra.mxu0 %v4319_v5  ;;  %3526 = vmatprep.subr.bf16.mxu1 %v4320_v6  ;;  %v546_v38 = vpack.c.bf16 %v438_v35, %v436_v34  ;;  %v547_v43 = vpack.c.bf16 %v443_v40, %v441_v39  ;;  %v309_v49 = vunpack.c.h.bf16 %v4881_v37  ;;  %v310_v52 = vunpack.c.l.bf16 %v4886_v41  ;;  %v4333_v24 = vld [vmem:[#allocation5 + $0x148] sm:$0xff]   ;;  %v5003_v17 = vld [vmem:[%s4829_s21 + $0x74] sm:$0x1]  ;;  %p4524_p5 = scmp.lt.s32.totalorder %s4522_s9, %s4516_s10 }
  0x7c   : > { %3718 = vmatprep.subr.bf16.mxu0 %v4321_v7  ;;  %v449_v53 = vrot.slane %v308_v48, 1  ;;  %v311_v55 = vunpack.c.l.bf16 %v4891_v45  ;;  %v312_v56 = vunpack.c.h.bf16 %v4891_v45  ;;  %v313_v59 = vunpack.c.l.bf16 %v4900_v50  ;;  %v4334_v26 = vld [vmem:[#allocation5 + $0x8] sm:$0xff]  }
  0x7d   : > { %3536 = vmatprep.mubr.bf16.mxu1 %v546_v38  ;;  %3728 = vmatprep.mubr.bf16.mxu0 %v547_v43  ;;  %v450_v54 = vrot.slane %v309_v49, 1  ;;  %v452_v58 = vrot.slane %v310_v52, 1  ;;  %v446_v62 = vsel %vm433_vm0, %v444_v44, %v445_v46  ;;  %v448_v63 = vsel %vm433_vm0, %v445_v46, %v447_v47  ;;  %v4948_v30 = vld [vmem:[%s4829_s21 + $0x54] sm:$0xff]   ;;  %v4951_v31 = vld [vmem:[%s4829_s21 + $0x5c] sm:$0x1]  ;;  %v4335_v44 = vld [vmem:[#allocation5 + $0x150] sm:$0xff]   ;;  %p4525_p9 = por %p4524_p5, %p4523_p3 }
  0x7e   : > { %3527 = vmatpush3.bf16.msra.mxu1 %v4320_v6  ;;  %v314_v1 = vunpack.c.l.bf16 %v4910_v57  ;;  %v315_v2 = vunpack.c.h.bf16 %v4910_v57  ;;  %v316_v3 = vunpack.c.l.bf16 %v4916_v60  ;;  %v454_v6 = vrot.slane %v311_v55, 1  ;;  %v5085_v41 = vld [vmem:[%s4829_s21 + $0x98] sm:$0x1] }
  0x7f   : > { %3719 = vmatpush3.bf16.msra.mxu0 %v4321_v7  ;;  %3528 = vmatprep.subr.bf16.mxu1 %v4322_v8  ;;  %v451_v4 = vsel %vm433_vm0, %v449_v53, %v450_v54  ;;  %v453_v5 = vsel %vm433_vm0, %v450_v54, %v452_v58  ;;  %v455_v7 = vrot.slane %v312_v56, 1  ;;  %v5648_v53 = vunpack.c.l.bf16 %v4951_v31  ;;  %p4526_p2 = pnand %p4525_p9, %p4519_p10 }
  0x80   : > { %3720 = vmatprep.subr.bf16.mxu0 %v4323_v9  ;;  %v4939_v25 = vpack.c.bf16 %v453_v5, %v451_v4  ;;  %v459_v27 = vrot.slane %v314_v1, 1  ;;  %v1009_v18 = vrot.slane %v306_v33, 2 }
  0x81   : > { %v456_v39 = vsel %vm433_vm0, %v454_v6, %v455_v7  ;;  %v4982_v6 = vld [vmem:[%s4829_s21 + $0x68] sm:$0x1] }
  0x82   : > { %3529 = vmatpush3.bf16.msra.mxu1 %v4322_v8  ;;  %v4929_v8 = vpack.c.bf16 %v448_v63, %v446_v62  ;;  %v4975_v63 = vld [vmem:[%s4829_s21 + $0x60] sm:$0xff]  }
  0x83   : > { %3721 = vmatpush3.bf16.msra.mxu0 %v4323_v9  ;;  %3530 = vmatprep.subr.bf16.mxu1 %v4324_v10  ;;  %v457_v9 = vrot.slane %v313_v59, 1 }
  0x84   : > { %3722 = vmatprep.subr.bf16.mxu0 %v4325_v11 }
  0x85   : > { %v458_v40 = vsel %vm433_vm0, %v455_v7, %v457_v9  ;;  %v472_v9 = vrot.slane %v5648_v53, 1  ;;  %v4343_v53 = vld [vmem:[#allocation5 + $0x20] sm:$0xff]  }
  0x86   : > { %3531 = vmatpush3.bf16.msra.mxu1 %v4324_v10  ;;  %v4934_v10 = vld [vmem:[%s4829_s21 + $0x48] sm:$0xff]   ;;  %v4966_v54 = vpack.c.bf16 %v458_v40, %v456_v39  ;;  %v4338_v39 = vld [vmem:[#allocation5 + $0x160] sm:$0xff]   ;;  %v5651_v40 = vunpack.c.l.bf16 %v4982_v6 }
  0x87   : > { %3723 = vmatpush3.bf16.msra.mxu0 %v4325_v11  ;;  %3532 = vmatprep.subr.bf16.mxu1 %v4326_v28  ;;  %v4937_v11 = vld [vmem:[%s4829_s21 + $0x50] sm:$0x1]  ;;  %v5663_v34 = vunpack.c.l.bf16 %v4934_v10  ;;  %v5659_v35 = vunpack.c.h.bf16 %v4934_v10 }
  0x88   : > { %3724 = vmatprep.subr.bf16.mxu0 %v4327_v29  ;;  %v5654_v38 = vunpack.c.l.bf16 %v4937_v11 }
  0x89   : > { %v464_v58 = vrot.slane %v5663_v34, 1 }
  0x8a   : > { %3533 = vmatpush3.bf16.msra.mxu1 %v4326_v28  ;;  %v460_v28 = vrot.slane %v315_v2, 1  ;;  %v467_v62 = vrot.slane %v5654_v38, 1  ;;  %v5057_v38 = vld [vmem:[%s4829_s21 + $0x8c] sm:$0x1] }
  0x8b   : > { %3725 = vmatpush3.bf16.msra.mxu0 %v4327_v29  ;;  %3534 = vmatprep.subr.bf16.mxu1 %v4328_v42  ;;  %v462_v29 = vrot.slane %v316_v3, 1 }
  0x8c   : > { %3726 = vmatprep.subr.bf16.mxu0 %v4329_v51  ;;  %v461_v46 = vsel %vm433_vm0, %v459_v27, %v460_v28  ;;  %v5649_v27 = vunpack.c.h.bf16 %v4975_v63 }
  0x8d   : > { %v463_v47 = vsel %vm433_vm0, %v460_v28, %v462_v29 }
  0x8e   : > { %3535 = vmatpush3.bf16.msra.mxu1 %v4328_v42  ;;  %v4337_v42 = vld [vmem:[#allocation5 + $0x10] sm:$0xff]   ;;  %v4977_v4 = vpack.c.bf16 %v463_v47, %v461_v46  ;;  %v1003_v46 = vrot.slane %v302_v19, 2  ;;  %v475_v15 = vrot.slane %v5649_v27, 1  ;;  %v5657_v27 = vunpack.c.l.bf16 %v5003_v17 }
  0x8f   : > { %3727 = vmatpush3.bf16.msra.mxu0 %v4329_v51  ;;  %3568 = vmatprep.subr.bf16.mxu1 %v4331_v61  ;;  %v5652_v51 = vunpack.c.h.bf16 %v4948_v30  ;;  %v5000_v47 = vld [vmem:[%s4829_s21 + $0x6c] sm:$0xff]  }
  0x90   : > { %3760 = vmatprep.subr.bf16.mxu0 %v4332_v0 }
  0x91   : > { %3537 = vmatmul.mubr.bf16.vlgmr.msra.gmra.mrb[0].mxu1 %v547_v43  ;;  %v5653_v43 = vunpack.c.l.bf16 %v4948_v30  ;;  %v470_v7 = vrot.slane %v5652_v51, 1 }
  0x92   : > { %3729 = vmatmul.mubr.bf16.vlgmr.msra.gmra.mrb[0].mxu0 %v4929_v8  ;;  %3569 = vmatpush3.bf16.msra.mxu1 %v4331_v61  ;;  %v465_v61 = vrot.slane %v5659_v35, 1  ;;  %v4342_v35 = vld [vmem:[#allocation5 + $0x178] sm:$0xff]  }
  0x93   : > { %3761 = vmatpush3.bf16.msra.mxu0 %v4332_v0  ;;  %3540 = vmatprep.mubr.bf16.mxu1 %v4929_v8  ;;  %v4336_v0 = vld [vmem:[#allocation5 + $0x158] sm:$0xff]   ;;  %v469_v5 = vrot.slane %v5653_v43, 1 }
  0x94   : > { %3762 = vmatprep.subr.bf16.mxu0 %v4333_v24  ;;  %3732 = vmatprep.mubr.bf16.mxu0 %v4939_v25  ;;  %v466_v28 = vsel %vm433_vm0, %v464_v58, %v465_v61  ;;  %v468_v29 = vsel %vm433_vm0, %v465_v61, %v467_v62  ;;  %v473_v61 = vsel %vm433_vm0, %v470_v7, %v472_v9  ;;  %v4339_v9 = vld [vmem:[#allocation5 + $0x168] sm:$0xff]  }
  0x95   : > { %3570 = vmatprep.subr.bf16.mxu1 %v4334_v26  ;;  %v471_v58 = vsel %vm433_vm0, %v469_v5, %v470_v7  ;;  %v5012_v62 = vpack.c.bf16 %v468_v29, %v466_v28  ;;  %v1004_v5 = vrot.slane %v303_v20, 2  ;;  %v1006_v7 = vrot.slane %v304_v21, 2  ;;  %v4345_v21 = vld [vmem:[#allocation5 + $0x28] sm:$0xff]  }
  0x96   : > { %3571 = vmatpush3.bf16.msra.mxu1 %v4334_v26  ;;  %v5650_v26 = vunpack.c.l.bf16 %v4975_v63  ;;  %v5025_v28 = vpack.c.bf16 %v473_v61, %v471_v58  ;;  %v5658_v29 = vunpack.c.h.bf16 %v5000_v47  ;;  %v5660_v20 = vunpack.c.h.bf16 %v5006_v16  ;;  %v4341_v58 = vld [vmem:[#allocation5 + $0x170] sm:$0xff]  }
  0x97   : > { %3763 = vmatpush3.bf16.msra.mxu0 %v4333_v24  ;;  %3572 = vmatprep.subr.bf16.mxu1 %v4337_v42  ;;  %v4340_v24 = vld [vmem:[#allocation5 + $0x18] sm:$0xff]  }
  0x98   : > { %3764 = vmatprep.subr.bf16.mxu0 %v4335_v44  ;;  %v474_v19 = vrot.slane %v5650_v26, 1  ;;  %v5030_v26 = vld [vmem:[%s4829_s21 + $0x80] sm:$0x1]  ;;  %v480_v23 = vrot.slane %v5658_v29, 1  ;;  %v5054_v43 = vld [vmem:[%s4829_s21 + $0x84] sm:$0xff]  }
  0x99   : > { %3541 = vmatmul.mubr.bf16.gmra.mrb[4].mxu1 %v4939_v25  ;;  %v5661_v61 = vunpack.c.l.bf16 %v5030_v26 }
  0x9a   : > { %3733 = vmatmul.mubr.bf16.gmra.mrb[4].mxu0 %v4966_v54  ;;  %3544 = vmatprep.mubr.bf16.mxu1 %v4966_v54 }
  0x9b   : > { %3765 = vmatpush3.bf16.msra.mxu0 %v4335_v44  ;;  %3736 = vmatprep.mubr.bf16.mxu0 %v4977_v4  ;;  %v1008_v44 = vrot.slane %v305_v32, 2  ;;  %v5655_v32 = vunpack.c.l.bf16 %v5000_v47 }
  0x9c   : > { %3766 = vmatprep.subr.bf16.mxu0 %v4336_v0  ;;  %3573 = vmatpush3.bf16.msra.mxu1 %v4337_v42  ;;  %v477_v42 = vrot.slane %v5651_v40, 1  ;;  %v5656_v40 = vunpack.c.l.bf16 %v5006_v16 }
  0x9d   : > { %3574 = vmatprep.subr.bf16.mxu1 %v4340_v24  ;;  %v479_v33 = vrot.slane %v5655_v32, 1  ;;  %v1007_v32 = vsel %vm997_vm1, %v1004_v5, %v1006_v7  ;;  %v5078_v7 = vld [vmem:[%s4829_s21 + $0x90] sm:$0xff]  }
  0x9e   : > { %v478_v51 = vsel %vm433_vm0, %v475_v15, %v477_v42  ;;  %v1014_v42 = vrot.slane %v309_v49, 2  ;;  %v1010_v49 = vsel %vm997_vm1, %v1008_v44, %v1009_v18 }
  0x9f   : > { %3767 = vmatpush3.bf16.msra.mxu0 %v4336_v0  ;;  %v1011_v0 = vrot.slane %v307_v36, 2  ;;  %v482_v36 = vrot.slane %v5657_v27, 1  ;;  %v4347_v27 = vld [vmem:[#allocation5 + $0x30] sm:$0xff]  }
  0xa0   : > { %3768 = vmatprep.subr.bf16.mxu0 %v4338_v39  ;;  %3575 = vmatpush3.bf16.msra.mxu1 %v4340_v24  ;;  %v476_v24 = vsel %vm433_vm0, %v474_v19, %v475_v15  ;;  %v484_v19 = vrot.slane %v5656_v40, 1  ;;  %v1013_v15 = vrot.slane %v308_v48, 2  ;;  %v485_v40 = vrot.slane %v5660_v20, 1 }
  0xa1   : > { %3545 = vmatmul.mubr.bf16.gmra.mrb[8].mxu1 %v4977_v4  ;;  %3576 = vmatprep.subr.bf16.mxu1 %v4343_v53  ;;  %v5067_v29 = vpack.c.bf16 %v478_v51, %v476_v24  ;;  %v481_v51 = vsel %vm433_vm0, %v479_v33, %v480_v23  ;;  %v1012_v24 = vsel %vm997_vm1, %v1009_v18, %v1011_v0  ;;  %v5668_v20 = vunpack.c.h.bf16 %v5054_v43  ;;  %v4344_v18 = vld [vmem:[#allocation5 + $0x180] sm:$0xff]  }
  0xa2   : > { %3737 = vmatmul.mubr.bf16.gmra.mrb[8].mxu0 %v5012_v62  ;;  %3548 = vmatprep.mubr.bf16.mxu1 %v5012_v62  ;;  %v486_v44 = vsel %vm433_vm0, %v484_v19, %v485_v40  ;;  %v5666_v33 = vunpack.c.l.bf16 %v5078_v7 }
  0xa3   : > { %3769 = vmatpush3.bf16.msra.mxu0 %v4338_v39  ;;  %3740 = vmatprep.mubr.bf16.mxu0 %v5025_v28  ;;  %v1005_v39 = vsel %vm997_vm1, %v1003_v46, %v1004_v5  ;;  %5693 = vst [vmem:[#allocation12_spill] sm:$0xff] %v5067_v29  ;;  %v487_v46 = vrot.slane %v5661_v61, 1  ;;  %v5662_v5 = vunpack.c.l.bf16 %v5054_v43  ;;  %v5667_v61 = vunpack.c.l.bf16 %v5057_v38 }
  0xa4   : > { %3770 = vmatprep.subr.bf16.mxu0 %v4339_v9  ;;  %3577 = vmatpush3.bf16.msra.mxu1 %v4343_v53  ;;  %v1016_v53 = vrot.slane %v310_v52, 2  ;;  %v5073_v48 = vpack.c.bf16 %v1007_v32, %v1005_v39  ;;  %v483_v52 = vsel %vm433_vm0, %v480_v23, %v482_v36  ;;  %v1015_v32 = vsel %vm997_vm1, %v1013_v15, %v1014_v42  ;;  %v5098_v36 = vld [vmem:[%s4829_s21 + $0xa4] sm:$0x1]  ;;  %v5105_v15 = vld [vmem:[%s4829_s21 + $0x9c] sm:$0xff]  }
  0xa5   : > { %3578 = vmatprep.subr.bf16.mxu1 %v4345_v21  ;;  %v5664_v23 = vunpack.c.h.bf16 %v5078_v7  ;;  %v489_v19 = vrot.slane %v5662_v5, 1  ;;  %v5665_v39 = vunpack.c.l.bf16 %v5085_v41  ;;  %v5671_v50 = vunpack.c.l.bf16 %v5098_v36 }
  0xa6   : > { %v1017_v0 = vsel %vm997_vm1, %v1014_v42, %v1016_v53  ;;  %v5109_v42 = vpack.c.bf16 %v1012_v24, %v1010_v49  ;;  %v5116_v53 = vld [vmem:[%s4829_s21 + $0xa8] sm:$0xff]   ;;  %v1019_v49 = vrot.slane %v312_v56, 2  ;;  %v1021_v24 = vrot.slane %v313_v59, 2  ;;  %v5140_v59 = vld [vmem:[%s4829_s21 + $0xb0] sm:$0x1] }
  0xa7   : > { %3771 = vmatpush3.bf16.msra.mxu0 %v4339_v9  ;;  %v4349_v9 = vld [vmem:[#allocation5 + $0x38] sm:$0xff]   ;;  %v5120_v34 = vpack.c.bf16 %v1017_v0, %v1015_v32  ;;  %v1023_v32 = vrot.slane %v314_v1, 2  ;;  %v5669_v56 = vunpack.c.l.bf16 %v5105_v15  ;;  %v5142_v0 = vld [vmem:[#allocation5 + $0x80] sm:$0xff]   ;;  %v1026_v1 = vrot.slane %v316_v3, 2  ;;  %v4348_v3 = vld [vmem:[#allocation5 + $0x190] sm:$0xff]  }
  0xa8   : > { %3772 = vmatprep.subr.bf16.mxu0 %v4341_v58  ;;  %3579 = vmatpush3.bf16.msra.mxu1 %v4345_v21  ;;  %v488_v21 = vsel %vm433_vm0, %v485_v40, %v487_v46  ;;  %v5107_v40 = vpack.c.bf16 %v483_v52, %v481_v51  ;;  %v490_v46 = vrot.slane %v5668_v20, 1  ;;  %v1018_v51 = vrot.slane %v311_v55, 2  ;;  %v4346_v52 = vld [vmem:[#allocation5 + $0x188] sm:$0xff]  }
  0xa9   : > { %3549 = vmatmul.mubr.bf16.gmra.mrb[12].mxu1 %v5025_v28  ;;  %3580 = vmatprep.subr.bf16.mxu1 %v4347_v27  ;;  %v5118_v5 = vpack.c.bf16 %v488_v21, %v486_v44  ;;  %v495_v44 = vrot.slane %v5664_v23, 1  ;;  %v497_v55 = vrot.slane %v5665_v39, 1  ;;  %v5670_v21 = vunpack.c.h.bf16 %v5105_v15 }
  0xaa   : > { %3741 = vmatmul.mubr.bf16.gmra.mrb[12].mxu0 %v5067_v29  ;;  %3552 = vmatprep.mubr.bf16.mxu1 %v5067_v29  ;;  %5694 = vst [vmem:[#allocation13_spill] sm:$0xff] %v5107_v40  ;;  %v1024_v23 = vrot.slane %v315_v2, 2  ;;  %v1022_v2 = vsel %vm997_vm1, %v1019_v49, %v1021_v24  ;;  %v5168_v24 = vld [vmem:[%s4829_s21 + $0xb4] sm:$0xff]   ;;  %v5696_v20 = vunpack.c.l.bf16 %v4934_v10 }
  0xab   : > { %3773 = vmatpush3.bf16.msra.mxu0 %v4341_v58  ;;  %3776 = vmatprep.mubr.bf16.mxu0 %v5073_v48  ;;  %v492_v58 = vrot.slane %v5667_v61, 1  ;;  %5695 = vst [vmem:[#allocation14_spill] sm:$0xff] %v5118_v5  ;;  %v5677_v61 = vunpack.c.l.bf16 %v5116_v53 }
  0xac   : > { %3774 = vmatprep.subr.bf16.mxu0 %v4342_v35  ;;  %3581 = vmatpush3.bf16.msra.mxu1 %v4347_v27  ;;  %v494_v27 = vrot.slane %v5666_v33, 1  ;;  %v1020_v33 = vsel %vm997_vm1, %v1018_v51, %v1019_v49  ;;  %v500_v51 = vrot.slane %v5670_v21, 1  ;;  %v502_v49 = vrot.slane %v5671_v50, 1 }
  0xad   : > { %3582 = vmatprep.subr.bf16.mxu1 %v4349_v9  ;;  %v493_v39 = vsel %vm433_vm0, %v490_v46, %v492_v58  ;;  %v499_v58 = vrot.slane %v5669_v56, 1  ;;  %v5177_v56 = vld [vmem:[%s4829_s21 + $0xbc] sm:$0x1]  ;;  %v5698_v50 = vunpack.c.l.bf16 %v4937_v11 }
  0xae   : > { %v496_v60 = vsel %vm433_vm0, %v494_v27, %v495_v44  ;;  %v1025_v27 = vsel %vm997_vm1, %v1023_v32, %v1024_v23  ;;  %v504_v32 = vrot.slane %v5677_v61, 1  ;;  %v503_v11 = vsel %vm433_vm0, %v500_v51, %v502_v49 }
  0xaf   : > { %3775 = vmatpush3.bf16.msra.mxu0 %v4342_v35  ;;  %v491_v35 = vsel %vm433_vm0, %v489_v19, %v490_v46  ;;  %v498_v46 = vsel %vm433_vm0, %v495_v44, %v497_v55  ;;  %v1028_v19 = vrot.slane %v5696_v20, 2  ;;  %v5697_v44 = vunpack.c.h.bf16 %v4934_v10 }
  0xb0   : > { %3808 = vmatprep.subr.bf16.mxu0 %v4344_v18  ;;  %3583 = vmatpush3.bf16.msra.mxu1 %v4349_v9  ;;  %v5180_v21 = vpack.c.bf16 %v493_v39, %v491_v35  ;;  %v1031_v9 = vrot.slane %v5698_v50, 2  ;;  %v5699_v20 = vunpack.c.h.bf16 %v5116_v53  ;;  %v501_v39 = vsel %vm433_vm0, %v499_v58, %v500_v51 }
  0xb1   : > { %3553 = vmatmul.mubr.bf16.gmra.mrb[16].mxu1 %v5107_v40  ;;  %v1029_v55 = vrot.slane %v5697_v44, 2  ;;  %3616 = vmatprep.subr.bf16.mxu1 %v5142_v0  ;;  %v5700_v44 = vunpack.c.l.bf16 %v5140_v59  ;;  %v5701_v50 = vunpack.c.l.bf16 %v4948_v30  ;;  %v5702_v35 = vunpack.c.h.bf16 %v4948_v30 }
  0xb2   : > { %3777 = vmatmul.mubr.bf16.vlgmr.msra.gmra.mrb[0].mxu0 %v5109_v42  ;;  %3556 = vmatprep.mubr.bf16.mxu1 %v5118_v5  ;;  %v5186_v5 = vpack.c.bf16 %v1022_v2, %v1020_v33  ;;  %v5679_v58 = vunpack.c.h.bf16 %v5168_v24  ;;  %v5678_v51 = vunpack.c.l.bf16 %v5177_v56  ;;  %v5704_v61 = vunpack.c.l.bf16 %v4975_v63 }
  0xb3   : > { %3809 = vmatpush3.bf16.msra.mxu0 %v4344_v18  ;;  %3780 = vmatprep.mubr.bf16.mxu0 %v5120_v34  ;;  %v1027_v18 = vsel %vm997_vm1, %v1024_v23, %v1026_v1  ;;  %v5188_v23 = vpack.c.bf16 %v498_v46, %v496_v60  ;;  %v505_v1 = vrot.slane %v5699_v20, 1  ;;  %v507_v40 = vrot.slane %v5700_v44, 1  ;;  %v4350_v44 = vld [vmem:[#allocation5 + $0x198] sm:$0xff]  }
  0xb4   : > { %3810 = vmatprep.subr.bf16.mxu0 %v4346_v52  ;;  %v5194_v29 = vpack.c.bf16 %v1027_v18, %v1025_v27  ;;  %v1033_v33 = vrot.slane %v5701_v50, 2  ;;  %v1034_v2 = vrot.slane %v5702_v35, 2  ;;  %v5703_v60 = vunpack.c.l.bf16 %v4951_v31 }
  0xb5   : > { %v5680_v20 = vunpack.c.l.bf16 %v5168_v24  ;;  %v1032_v49 = vsel %vm997_vm1, %v1029_v55, %v1031_v9  ;;  %v506_v31 = vsel %vm433_vm0, %v504_v32, %v505_v1  ;;  %v508_v27 = vsel %vm433_vm0, %v505_v1, %v507_v40 }
  0xb6   : > { %v1036_v46 = vrot.slane %v5703_v60, 2  ;;  %v5215_v18 = vpack.c.bf16 %v503_v11, %v501_v39  ;;  %v1035_v50 = vsel %vm997_vm1, %v1033_v33, %v1034_v2  ;;  %v1038_v9 = vrot.slane %v5704_v61, 2 }
  0xb7   : > { %3811 = vmatpush3.bf16.msra.mxu0 %v4346_v52  ;;  %v1030_v52 = vsel %vm997_vm1, %v1028_v19, %v1029_v55  ;;  %v4353_v19 = vld [vmem:[#allocation5 + $0x1a0] sm:$0xff]   ;;  %v509_v60 = vrot.slane %v5680_v20, 1  ;;  %v5225_v40 = vpack.c.bf16 %v508_v27, %v506_v31  ;;  %v510_v32 = vrot.slane %v5679_v58, 1 }
  0xb8   : > { %3812 = vmatprep.subr.bf16.mxu0 %v4348_v3  ;;  %v1037_v35 = vsel %vm997_vm1, %v1034_v2, %v1036_v46  ;;  %v5223_v55 = vpack.c.bf16 %v1032_v49, %v1030_v52  ;;  %v5706_v1 = vunpack.c.h.bf16 %v4975_v63  ;;  %v5707_v11 = vunpack.c.l.bf16 %v4982_v6 }
  0xb9   : > { %3557 = vmatmul.mubr.bf16.gmra.mrb[20].mxu1 %v5180_v21  ;;  %5705 = vst [vmem:[#allocation15_spill] sm:$0xff] %v5225_v40  ;;  %v5708_v2 = vunpack.c.l.bf16 %v5000_v47  ;;  %v5709_v46 = vunpack.c.h.bf16 %v5000_v47  ;;  %v5239_v49 = vpack.c.bf16 %v1037_v35, %v1035_v50  ;;  %v5710_v31 = vunpack.c.l.bf16 %v5003_v17 }
  0xba   : > { %3781 = vmatmul.mubr.bf16.gmra.mrb[4].mxu0 %v5186_v5  ;;  %3560 = vmatprep.mubr.bf16.mxu1 %v5188_v23  ;;  %v1039_v39 = vrot.slane %v5706_v1, 2  ;;  %v1041_v33 = vrot.slane %v5707_v11, 2  ;;  %v5711_v58 = vunpack.c.l.bf16 %v4840_v12  ;;  %v5712_v6 = vunpack.c.h.bf16 %v4840_v12 }
  0xbb   : > { %3784 = vmatprep.mubr.bf16.mxu0 %v5194_v29  ;;  %3813 = vmatpush3.bf16.msra.mxu0 %v4348_v3  ;;  %v512_v3 = vrot.slane %v5678_v51, 1  ;;  %v1043_v61 = vrot.slane %v5708_v2, 2  ;;  %v1044_v52 = vrot.slane %v5709_v46, 2  ;;  %v1046_v27 = vrot.slane %v5710_v31, 2  ;;  %v4357_v51 = vld [vmem:[#allocation5 + $0x1a8] sm:$0xff]  }
  0xbc   : > { %3814 = vmatprep.subr.bf16.mxu0 %v4350_v44  ;;  %v998_v1 = vrot.slane %v5711_v58, 2  ;;  %v999_v11 = vrot.slane %v5712_v6, 2  ;;  %v511_v2 = vsel %vm433_vm0, %v509_v60, %v510_v32  ;;  %v5713_v50 = vunpack.c.l.bf16 %v4843_v13  ;;  %v4361_v6 = vld [vmem:[#allocation5 + $0x1b0] sm:$0xff]  }
  0xbd   : > { %v513_v46 = vsel %vm433_vm0, %v510_v32, %v512_v3  ;;  %v1040_v17 = vsel %vm997_vm1, %v1038_v9, %v1039_v39  ;;  %v1042_v58 = vsel %vm997_vm1, %v1039_v39, %v1041_v33  ;;  %v1045_v60 = vsel %vm997_vm1, %v1043_v61, %v1044_v52 }
  0xbe   : > { %v5257_v35 = vsel %vm997_vm1, %v998_v1, %v999_v11  ;;  %v5714_v32 = vunpack.c.l.bf16 %v5006_v16  ;;  %v5715_v13 = vunpack.c.h.bf16 %v5006_v16  ;;  %v1047_v9 = vsel %vm997_vm1, %v1044_v52, %v1046_v27 }
  0xbf   : > { %3815 = vmatpush3.bf16.msra.mxu0 %v4350_v44  ;;  %v1001_v44 = vrot.slane %v5713_v50, 2  ;;  %v5716_v39 = vunpack.c.l.bf16 %v5030_v26  ;;  %v5717_v1 = vunpack.c.l.bf16 %v5054_v43  ;;  %v5718_v52 = vunpack.c.h.bf16 %v5054_v43 }
  0xc0   : > { %3816 = vmatprep.subr.bf16.mxu0 %v4353_v19  ;;  %v1048_v3 = vrot.slane %v5714_v32, 2  ;;  %v1049_v31 = vrot.slane %v5715_v13, 2  ;;  %v5275_v32 = vpack.c.bf16 %v513_v46, %v511_v2  ;;  %v5277_v13 = vpack.c.bf16 %v1042_v58, %v1040_v17 }
  0xc1   : > { %3561 = vmatmul.mubr.bf16.gmra.mrb[24].mxu1 %v5215_v18  ;;  %v5266_v50 = vsel %vm997_vm1, %v999_v11, %v1001_v44  ;;  %v1051_v33 = vrot.slane %v5716_v39, 2  ;;  %v1053_v20 = vrot.slane %v5717_v1, 2  ;;  %v1054_v27 = vrot.slane %v5718_v52, 2 }
  0xc2   : > { %3785 = vmatmul.mubr.bf16.gmra.mrb[8].mxu0 %v5223_v55  ;;  %3564 = vmatprep.mubr.bf16.mxu1 %v5225_v40  ;;  %v1110_v61 = vpack.c.bf16 %v5266_v50, %v5257_v35  ;;  %v5279_v40 = vpack.c.bf16 %v1047_v9, %v1045_v60  ;;  %v5719_v26 = vunpack.c.l.bf16 %v5057_v38  ;;  %v1050_v2 = vsel %vm997_vm1, %v1048_v3, %v1049_v31  ;;  %v5293_v38 = vld [vmem:[#allocation5 + $0x1c0] sm:$0xff]   ;;  %v4386_v35 = vld [vmem:[#allocation5 + $0xd0] sm:$0xff]   ;;  %v4389_v50 = vld [vmem:[#allocation5 + $0xd8] sm:$0xff]  }
  0xc3   : > { %3788 = vmatprep.mubr.bf16.mxu0 %v5239_v49  ;;  %3817 = vmatpush3.bf16.msra.mxu0 %v4353_v19  ;;  %v4365_v19 = vld [vmem:[#allocation5 + $0x1b8] sm:$0xff]   ;;  %v1052_v46 = vsel %vm997_vm1, %v1049_v31, %v1051_v33  ;;  %v5721_v9 = vunpack.c.h.bf16 %v5078_v7  ;;  %v5722_v31 = vunpack.c.l.bf16 %v5085_v41  ;;  %v5723_v39 = vunpack.c.l.bf16 %v5105_v15 }
  0xc4   : > { %3818 = vmatprep.subr.bf16.mxu0 %v4357_v51  ;;  %v1056_v11 = vrot.slane %v5719_v26, 2  ;;  %v5295_v17 = vpack.c.bf16 %v1052_v46, %v1050_v2  ;;  %v5724_v1 = vunpack.c.h.bf16 %v5105_v15 }
  0xc5   : > { %v1059_v3 = vrot.slane %v5721_v9, 2  ;;  %v1063_v33 = vrot.slane %v5723_v39, 2  ;;  %v5728_v9 = vunpack.c.l.bf16 %v5140_v59 }
  0xc6   : > { %v1057_v44 = vsel %vm997_vm1, %v1054_v27, %v1056_v11  ;;  %v1064_v52 = vrot.slane %v5724_v1, 2  ;;  %v4360_v11 = vld [vmem:[#allocation5 + $0x90] sm:$0xff]  }
  0xc7   : > { %3819 = vmatpush3.bf16.msra.mxu0 %v4357_v51  ;;  %v1055_v51 = vsel %vm997_vm1, %v1053_v20, %v1054_v27  ;;  %v4356_v20 = vld [vmem:[#allocation5 + $0x88] sm:$0xff]   ;;  %v5725_v27 = vunpack.c.l.bf16 %v5098_v36 }
  0xc8   : > { %3820 = vmatprep.subr.bf16.mxu0 %v4361_v6  ;;  %v5297_v58 = vpack.c.bf16 %v1057_v44, %v1055_v51  ;;  %v1065_v36 = vsel %vm997_vm1, %v1063_v33, %v1064_v52  ;;  %v5727_v44 = vunpack.c.h.bf16 %v5116_v53  ;;  %v5730_v33 = vunpack.c.h.bf16 %v5168_v24 }
  0xc9   : > { %3565 = vmatmul.mubr.bf16.gmra.mrb[28].mxu1 %v5275_v32  ;;  %v1066_v26 = vrot.slane %v5725_v27, 2  ;;  %v5338_v27 = vld [vmem:[%s4829_s21 + $0xc0] sm:$0xff]  }
  0xca   : > { %3789 = vmatmul.mubr.bf16.gmra.mrb[12].mxu0 %v5277_v13  ;;  %3584 = vmatprep.mubr.bf16.mxu1 %v4840_v12  ;;  %v5720_v12 = vunpack.c.l.bf16 %v5078_v7  ;;  %v1074_v1 = vrot.slane %v5730_v33, 2 }
  0xcb   : > { %3792 = vmatprep.mubr.bf16.mxu0 %v5279_v40  ;;  %3821 = vmatpush3.bf16.msra.mxu0 %v4361_v6  ;;  %v1061_v6 = vrot.slane %v5722_v31, 2  ;;  %v1067_v2 = vsel %vm997_vm1, %v1064_v52, %v1066_v26  ;;  %v4364_v31 = vld [vmem:[#allocation5 + $0x98] sm:$0xff]  }
  0xcc   : > { %3822 = vmatprep.subr.bf16.mxu0 %v4365_v19  ;;  %v1058_v60 = vrot.slane %v5720_v12, 2  ;;  %v1069_v12 = vrot.slane %v5727_v44, 2  ;;  %v295_v26 = vld [vmem:[%s4829_s21 + $0xc8] sm:$0x1]  ;;  %v4368_v44 = vld [vmem:[#allocation5 + $0xa0] sm:$0xff]  }
  0xce   : > { %v1060_v41 = vsel %vm997_vm1, %v1058_v60, %v1059_v3  ;;  %v5327_v60 = vpack.c.bf16 %v1067_v2, %v1065_v36  ;;  %v349_v36 = vunpack.c.l.bf16 %v295_v26 }
  0xcf   : > { %3823 = vmatpush3.bf16.msra.mxu0 %v4365_v19  ;;  %v1062_v19 = vsel %vm997_vm1, %v1059_v3, %v1061_v6  ;;  %v1071_v3 = vrot.slane %v5728_v9, 2  ;;  %v5729_v6 = vunpack.c.l.bf16 %v5168_v24 }
  0xd0   : > { %3856 = vmatprep.subr.bf16.mxu0 %v5293_v38  ;;  %v5321_v46 = vpack.c.bf16 %v1062_v19, %v1060_v41  ;;  %v347_v19 = vunpack.c.l.bf16 %v5338_v27 }
  0xd1   : > { %3585 = vmatmul.mubr.bf16.vlgmr.msra.gmra.mrb[0].mxu1 %v4846_v14  ;;  %v1073_v39 = vrot.slane %v5729_v6, 2  ;;  %v1072_v41 = vsel %vm997_vm1, %v1069_v12, %v1071_v3 }
  0xd2   : > { %3793 = vmatmul.mubr.bf16.gmra.mrb[16].mxu0 %v5295_v17  ;;  %3617 = vmatpush3.bf16.msra.mxu1 %v5142_v0  ;;  %v5726_v0 = vunpack.c.l.bf16 %v5116_v53 }
  0xd3   : > { %3588 = vmatprep.mubr.bf16.mxu1 %v4858_v22  ;;  %3796 = vmatprep.mubr.bf16.mxu0 %v5297_v58  ;;  %v1075_v2 = vsel %vm997_vm1, %v1073_v39, %v1074_v1  ;;  %v1649_v39 = vrot.slane %v349_v36, 1 }
  0xd4   : > { %3618 = vmatprep.subr.bf16.mxu1 %v4356_v20  ;;  %v1068_v51 = vrot.slane %v5726_v0, 2 }
  0xd6   : > { %3619 = vmatpush3.bf16.msra.mxu1 %v4356_v20  ;;  %v5731_v20 = vunpack.c.l.bf16 %v5177_v56  ;;  %v1070_v59 = vsel %vm997_vm1, %v1068_v51, %v1069_v12  ;;  %v348_v56 = vunpack.c.h.bf16 %v5338_v27  ;;  %v1912_v51 = vrot.slane %v347_v19, 2 }
  0xd7   : > { %3620 = vmatprep.subr.bf16.mxu1 %v4360_v11  ;;  %v5351_v9 = vpack.c.bf16 %v1072_v41, %v1070_v59  ;;  %v1646_v12 = vrot.slane %v347_v19, 1  ;;  %v4380_v19 = vld [vmem:[#allocation5 + $0xb8] sm:$0xff]  }
  0xd8   : > { %v1076_v52 = vrot.slane %v5731_v20, 2  ;;  %v1913_v33 = vrot.slane %v348_v56, 2  ;;  %v1915_v20 = vrot.slane %v349_v36, 2  ;;  %v1647_v3 = vrot.slane %v348_v56, 1  ;;  %v4382_v56 = vld [vmem:[#allocation5 + $0xc0] sm:$0xff]   ;;  %v4373_v36 = vld [vmem:[#allocation5 + $0x1c8] sm:$0xff]  }
  0xd9   : > { %3589 = vmatmul.mubr.bf16.gmra.mrb[4].mxu1 %v4881_v37 }
  0xda   : > { %3797 = vmatmul.mubr.bf16.gmra.mrb[20].mxu0 %v5321_v46  ;;  %3592 = vmatprep.mubr.bf16.mxu1 %v4891_v45  ;;  %v1077_v0 = vsel %vm997_vm1, %v1074_v1, %v1076_v52  ;;  %v1914_v1 = vsel %vm997_vm1, %v1912_v51, %v1913_v33  ;;  %v1916_v52 = vsel %vm997_vm1, %v1913_v33, %v1915_v20  ;;  %v4383_v51 = vld [vmem:[#allocation5 + $0x1e0] sm:$0xff]   ;;  %v4387_v33 = vld [vmem:[#allocation5 + $0x1f0] sm:$0xff]   ;;  %v4391_v20 = vld [vmem:[#allocation5 + $0x1f8] sm:$0xff]  }
  0xdb   : > { %3800 = vmatprep.mubr.bf16.mxu0 %v5327_v60  ;;  %3621 = vmatpush3.bf16.msra.mxu1 %v4360_v11  ;;  %v5353_v6 = vpack.c.bf16 %v1077_v0, %v1075_v2  ;;  %v4372_v11 = vld [vmem:[#allocation5 + $0xa8] sm:$0xff]   ;;  %v1648_v26 = vsel %vm433_vm0, %v1646_v12, %v1647_v3  ;;  %v1650_v59 = vsel %vm433_vm0, %v1647_v3, %v1649_v39  ;;  %v4377_v0 = vld [vmem:[#allocation5 + $0x1d0] sm:$0xff]   ;;  %v5402_v39 = vld [vmem:[%s4829_s21 + $0xd4] sm:$0x1] }
  0xdc   : > { %3622 = vmatprep.subr.bf16.mxu1 %v4364_v31  ;;  %v5363_v41 = vpack.c.bf16 %v1650_v59, %v1648_v26  ;;  %v5365_v2 = vpack.c.bf16 %v1916_v52, %v1914_v1  ;;  %v4384_v12 = vld [vmem:[#allocation5 + $0xc8] sm:$0xff]   ;;  %v352_v59 = vunpack.c.l.bf16 %v5402_v39 }
  0xdd   : > { %v4394_v3 = vld [vmem:[#allocation5 + $0xe8] sm:$0xff]  }
  0xdf   : > { %3623 = vmatpush3.bf16.msra.mxu1 %v4364_v31  ;;  %v4376_v31 = vld [vmem:[#allocation5 + $0xb0] sm:$0xff]  }
  0xe0   : > { %3624 = vmatprep.subr.bf16.mxu1 %v4368_v44 }
  0xe1   : > { %3593 = vmatmul.mubr.bf16.gmra.mrb[8].mxu1 %v4910_v57 }
  0xe2   : > { %3801 = vmatmul.mubr.bf16.gmra.mrb[24].mxu0 %v5351_v9  ;;  %3596 = vmatprep.mubr.bf16.mxu1 %v4934_v10 }
  0xe3   : > { %3804 = vmatprep.mubr.bf16.mxu0 %v5353_v6  ;;  %3625 = vmatpush3.bf16.msra.mxu1 %v4368_v44  ;;  %v4381_v44 = vld [vmem:[#allocation5 + $0x1d8] sm:$0xff]  }
  0xe4   : > { %3626 = vmatprep.subr.bf16.mxu1 %v4372_v11 }
  0xe7   : > { %3627 = vmatpush3.bf16.msra.mxu1 %v4372_v11  ;;  %v4393_v11 = vld [vmem:[#allocation5 + $0x200] sm:$0xff]  }
  0xe8   : > { %3628 = vmatprep.subr.bf16.mxu1 %v4376_v31 }
  0xe9   : > { %3597 = vmatmul.mubr.bf16.gmra.mrb[12].mxu1 %v4948_v30 }
  0xea   : > { %3805 = vmatmul.mubr.bf16.gmra.mrb[28].mxu0 %v5365_v2  ;;  %3600 = vmatprep.mubr.bf16.mxu1 %v4975_v63 }
  0xeb   : > { %3824 = vmatprep.mubr.bf16.mxu0 %v4858_v22  ;;  %3629 = vmatpush3.bf16.msra.mxu1 %v4376_v31 }
  0xec   : > { %3630 = vmatprep.subr.bf16.mxu1 %v4380_v19 }
  0xef   : > { %3631 = vmatpush3.bf16.msra.mxu1 %v4380_v19  ;;  %v4396_v19 = vld [vmem:[#allocation5 + $0xf0] sm:$0xff]  }
  0xf0   : > { %3664 = vmatprep.subr.bf16.mxu1 %v4382_v56 }
  0xf1   : > { %3601 = vmatmul.mubr.bf16.gmra.mrb[16].mxu1 %v5000_v47 }
  0xf2   : > { %3825 = vmatmul.mubr.bf16.vlgmr.msra.gmra.mrb[0].mxu0 %v4881_v37  ;;  %3604 = vmatprep.mubr.bf16.mxu1 %v5006_v16 }
  0xf3   : > { %3857 = vmatpush3.bf16.msra.mxu0 %v5293_v38  ;;  %3828 = vmatprep.mubr.bf16.mxu0 %v4891_v45  ;;  %v4385_v38 = vld [vmem:[#allocation5 + $0x1e8] sm:$0xff]  }
  0xf4   : > { %3858 = vmatprep.subr.bf16.mxu0 %v4373_v36 }
  0xf7   : > { %3859 = vmatpush3.bf16.msra.mxu0 %v4373_v36 }
  0xf8   : > { %3860 = vmatprep.subr.bf16.mxu0 %v4377_v0 }
  0xf9   : > { %3605 = vmatmul.mubr.bf16.gmra.mrb[20].mxu1 %v5054_v43 }
  0xfa   : > { %3829 = vmatmul.mubr.bf16.gmra.mrb[4].mxu0 %v4910_v57  ;;  %3608 = vmatprep.mubr.bf16.mxu1 %v5078_v7 }
  0xfb   : > { %3832 = vmatprep.mubr.bf16.mxu0 %v4934_v10  ;;  %3861 = vmatpush3.bf16.msra.mxu0 %v4377_v0 }
  0xfc   : > { %3862 = vmatprep.subr.bf16.mxu0 %v4381_v44 }
  0xff   : > { %3863 = vmatpush3.bf16.msra.mxu0 %v4381_v44  ;;  %v4398_v44 = vld [vmem:[#allocation5 + $0xf8] sm:$0xff]  }
 0x100   : > { %3864 = vmatprep.subr.bf16.mxu0 %v4383_v51 }
 0x101   : > { %3609 = vmatmul.mubr.bf16.gmra.mrb[24].mxu1 %v5105_v15 }
 0x102   : > { %3833 = vmatmul.mubr.bf16.gmra.mrb[8].mxu0 %v4948_v30  ;;  %3612 = vmatprep.mubr.bf16.mxu1 %v5116_v53 }
 0x103   : > { %3836 = vmatprep.mubr.bf16.mxu0 %v4975_v63  ;;  %3865 = vmatpush3.bf16.msra.mxu0 %v4383_v51 }
 0x104   : > { %3866 = vmatprep.subr.bf16.mxu0 %v4385_v38 }
 0x107   : > { %3867 = vmatpush3.bf16.msra.mxu0 %v4385_v38  ;;  %v4395_v38 = vld [vmem:[#allocation5 + $0x208] sm:$0xff]  }
 0x108   : > { %3868 = vmatprep.subr.bf16.mxu0 %v4387_v33 }
 0x109   : > { %3613 = vmatmul.mubr.bf16.gmra.mrb[28].mxu1 %v5168_v24 }
 0x10a   : > { %3837 = vmatmul.mubr.bf16.gmra.mrb[12].mxu0 %v5000_v47  ;;  %3632 = vmatprep.mubr.bf16.mxu1 %v1110_v61  ;;  %v5399_v61 = vld [vmem:[%s4829_s21 + $0xcc] sm:$0xff]  }
 0x10b   : > { %3840 = vmatprep.mubr.bf16.mxu0 %v5006_v16  ;;  %3869 = vmatpush3.bf16.msra.mxu0 %v4387_v33  ;;  %v350_v1 = vunpack.c.l.bf16 %v5399_v61  ;;  %v351_v52 = vunpack.c.h.bf16 %v5399_v61  ;;  %v4422_v33 = vld [vmem:[#allocation5 + $0x100] sm:$0xff]  }
 0x10c   : > { %3870 = vmatprep.subr.bf16.mxu0 %v4391_v20 }
 0x10d   : > { %v2706_v31 = vrot.slane %v350_v1, 2  ;;  %v2707_v26 = vrot.slane %v351_v52, 2 }
 0x10f   : > { %3871 = vmatpush3.bf16.msra.mxu0 %v4391_v20  ;;  %v5418_v36 = vsel %vm997_vm1, %v2706_v31, %v2707_v26  ;;  %v4397_v20 = vld [vmem:[#allocation5 + $0x210] sm:$0xff]  }
 0x110   : > { %3904 = vmatprep.subr.bf16.mxu0 %v4393_v11 }
 0x111   : > { %3633 = vmatmul.mubr.bf16.vlgmr.msra.gmra.mrb[0].mxu1 %v5073_v48  ;;  %v4392_v48 = vld [vmem:[#allocation5 + $0xe0] sm:$0xff]  }
 0x112   : > { %3841 = vmatmul.mubr.bf16.gmra.mrb[16].mxu0 %v5054_v43  ;;  %3665 = vmatpush3.bf16.msra.mxu1 %v4382_v56  ;;  %v2709_v56 = vrot.slane %v352_v59, 2 }
 0x113   : > { %3636 = vmatprep.mubr.bf16.mxu1 %v5109_v42  ;;  %3844 = vmatprep.mubr.bf16.mxu0 %v5078_v7 }
 0x114   : > { %3666 = vmatprep.subr.bf16.mxu1 %v4384_v12  ;;  %v5421_v0 = vsel %vm997_vm1, %v2707_v26, %v2709_v56 }
 0x115   : > { %v2713_v51 = vpack.c.bf16 %v5421_v0, %v5418_v36 }
 0x116   : > { %3667 = vmatpush3.bf16.msra.mxu1 %v4384_v12  ;;  %v5733_v12 = vld [vmem:[#allocation13_spill] sm:$0xff] }
 0x117   : > { %3668 = vmatprep.subr.bf16.mxu1 %v4386_v35 }
 0x119   : > { %3637 = vmatmul.mubr.bf16.gmra.mrb[4].mxu1 %v5120_v34 }
 0x11a   : > { %3845 = vmatmul.mubr.bf16.gmra.mrb[20].mxu0 %v5105_v15  ;;  %3640 = vmatprep.mubr.bf16.mxu1 %v5186_v5 }
 0x11b   : > { %3848 = vmatprep.mubr.bf16.mxu0 %v5116_v53  ;;  %3669 = vmatpush3.bf16.msra.mxu1 %v4386_v35  ;;  %v5734_v35 = vld [vmem:[#allocation14_spill] sm:$0xff] }
 0x11c   : > { %3670 = vmatprep.subr.bf16.mxu1 %v4389_v50 }
 0x11f   : > { %3671 = vmatpush3.bf16.msra.mxu1 %v4389_v50  ;;  %v4424_v50 = vld [vmem:[#allocation5 + $0x110] sm:$0xff]  }
 0x120   : > { %3672 = vmatprep.subr.bf16.mxu1 %v4392_v48 }
 0x121   : > { %3641 = vmatmul.mubr.bf16.gmra.mrb[8].mxu1 %v5194_v29 }
 0x122   : > { %3849 = vmatmul.mubr.bf16.gmra.mrb[24].mxu0 %v5168_v24  ;;  %3644 = vmatprep.mubr.bf16.mxu1 %v5223_v55 }
 0x123   : > { %3852 = vmatprep.mubr.bf16.mxu0 %v5338_v27  ;;  %3673 = vmatpush3.bf16.msra.mxu1 %v4392_v48  ;;  %v2441_v48 = vrot.slane %v351_v52, 1  ;;  %v4428_v52 = vld [vmem:[#allocation5 + $0x130] sm:$0xff]  }
 0x124   : > { %3674 = vmatprep.subr.bf16.mxu1 %v4394_v3 }
 0x127   : > { %3675 = vmatpush3.bf16.msra.mxu1 %v4394_v3  ;;  %v2443_v3 = vrot.slane %v352_v59, 1 }
 0x128   : > { %3676 = vmatprep.subr.bf16.mxu1 %v4396_v19 }
 0x129   : > { %3645 = vmatmul.mubr.bf16.gmra.mrb[12].mxu1 %v5239_v49 }
 0x12a   : > { %3853 = vmatmul.mubr.bf16.gmra.mrb[28].mxu0 %v5399_v61  ;;  %3648 = vmatprep.mubr.bf16.mxu1 %v5277_v13  ;;  %v4427_v61 = vld [vmem:[#allocation5 + $0x128] sm:$0xff]  }
 0x12b   : > { %3872 = vmatprep.mubr.bf16.mxu0 %v4929_v8  ;;  %3677 = vmatpush3.bf16.msra.mxu1 %v4396_v19  ;;  %v4399_v8 = vld [vmem:[#allocation5 + $0x218] sm:$0xff]  }
 0x12c   : > { %3678 = vmatprep.subr.bf16.mxu1 %v4398_v44 }
 0x12f   : > { %3679 = vmatpush3.bf16.msra.mxu1 %v4398_v44 }
 0x130   : > { %3952 = vmatprep.subr.bf16.mxu1 %v4422_v33 }
 0x131   : > { %3649 = vmatmul.mubr.bf16.gmra.mrb[16].mxu1 %v5279_v40 }
 0x132   : > { %3873 = vmatmul.mubr.bf16.vlgmr.msra.gmra.mrb[0].mxu0 %v4939_v25  ;;  %3652 = vmatprep.mubr.bf16.mxu1 %v5295_v17  ;;  %v4400_v25 = vld [vmem:[#allocation5 + $0x220] sm:$0xff]  }
 0x133   : > { %3905 = vmatpush3.bf16.msra.mxu0 %v4393_v11  ;;  %3876 = vmatprep.mubr.bf16.mxu0 %v4966_v54  ;;  %v4401_v11 = vld [vmem:[#allocation5 + $0x228] sm:$0xff]  }
 0x134   : > { %3906 = vmatprep.subr.bf16.mxu0 %v4395_v38  ;;  %v5732_v54 = vld [vmem:[#allocation12_spill] sm:$0xff] }
 0x137   : > { %3907 = vmatpush3.bf16.msra.mxu0 %v4395_v38 }
 0x138   : > { %3908 = vmatprep.subr.bf16.mxu0 %v4397_v20 }
 0x139   : > { %3653 = vmatmul.mubr.bf16.gmra.mrb[20].mxu1 %v5297_v58 }
 0x13a   : > { %3877 = vmatmul.mubr.bf16.gmra.mrb[4].mxu0 %v4977_v4  ;;  %3656 = vmatprep.mubr.bf16.mxu1 %v5321_v46  ;;  %v4402_v4 = vld [vmem:[#allocation5 + $0x230] sm:$0xff]  }
 0x13b   : > { %3880 = vmatprep.mubr.bf16.mxu0 %v5012_v62  ;;  %3909 = vmatpush3.bf16.msra.mxu0 %v4397_v20  ;;  %v4403_v62 = vld [vmem:[#allocation5 + $0x238] sm:$0xff]  }
 0x13c   : > { %3910 = vmatprep.subr.bf16.mxu0 %v4399_v8 }
 0x13f   : > { %3911 = vmatpush3.bf16.msra.mxu0 %v4399_v8 }
 0x140   : > { %3912 = vmatprep.subr.bf16.mxu0 %v4400_v25 }
 0x141   : > { %3657 = vmatmul.mubr.bf16.gmra.mrb[24].mxu1 %v5327_v60 }
 0x142   : > { %3881 = vmatmul.mubr.bf16.gmra.mrb[8].mxu0 %v5025_v28  ;;  %3660 = vmatprep.mubr.bf16.mxu1 %v5351_v9  ;;  %v4423_v28 = vld [vmem:[#allocation5 + $0x108] sm:$0xff]  }
 0x143   : > { %3884 = vmatprep.mubr.bf16.mxu0 %v5732_v54  ;;  %3913 = vmatpush3.bf16.msra.mxu0 %v4400_v25 }
 0x144   : > { %3914 = vmatprep.subr.bf16.mxu0 %v4401_v11 }
 0x147   : > { %3915 = vmatpush3.bf16.msra.mxu0 %v4401_v11 }
 0x148   : > { %3916 = vmatprep.subr.bf16.mxu0 %v4402_v4 }
 0x149   : > { %3661 = vmatmul.mubr.bf16.gmra.mrb[28].mxu1 %v5353_v6 }
 0x14a   : > { %3885 = vmatmul.mubr.bf16.gmra.mrb[12].mxu0 %v5733_v12  ;;  %3680 = vmatprep.mubr.bf16.mxu1 %v4846_v14  ;;  %v5735_v14 = vld [vmem:[#allocation15_spill] sm:$0xff] }
 0x14b   : > { %3888 = vmatprep.mubr.bf16.mxu0 %v5734_v35  ;;  %3917 = vmatpush3.bf16.msra.mxu0 %v4402_v4 }
 0x14c   : > { %3918 = vmatprep.subr.bf16.mxu0 %v4403_v62 }
 0x14f   : > { %3919 = vmatpush3.bf16.msra.mxu0 %v4403_v62 }
 0x151   : > { %3681 = vmatmul.mubr.bf16.vlgmr.msra.gmra.mrb[0].mxu1 %v4858_v22  ;;  %v4425_v22 = vld [vmem:[#allocation5 + $0x118] sm:$0xff]  }
 0x152   : > { %3889 = vmatmul.mubr.bf16.gmra.mrb[16].mxu0 %v5180_v21  ;;  %3960 = vmatpush3.bf16.msra.mxu1 %v4422_v33 }
 0x153   : > { %3684 = vmatprep.mubr.bf16.mxu1 %v4881_v37  ;;  %3892 = vmatprep.mubr.bf16.mxu0 %v5188_v23  ;;  %v2440_v37 = vrot.slane %v350_v1, 1  ;;  %v2444_v1 = vsel %vm433_vm0, %v2441_v48, %v2443_v3 }
 0x154   : > { %3953 = vmatprep.subr.bf16.mxu1 %v4423_v28 }
 0x156   : > { %3961 = vmatpush3.bf16.msra.mxu1 %v4423_v28 }
 0x157   : > { %3954 = vmatprep.subr.bf16.mxu1 %v4424_v50 }
 0x159   : > { %3685 = vmatmul.mubr.bf16.gmra.mrb[4].mxu1 %v4891_v45  ;;  %v4426_v45 = vld [vmem:[#allocation5 + $0x120] sm:$0xff]  }
 0x15a   : > { %3893 = vmatmul.mubr.bf16.gmra.mrb[20].mxu0 %v5215_v18  ;;  %3688 = vmatprep.mubr.bf16.mxu1 %v4910_v57  ;;  %v2442_v57 = vsel %vm433_vm0, %v2440_v37, %v2441_v48 }
 0x15b   : > { %3896 = vmatprep.mubr.bf16.mxu0 %v5735_v14  ;;  %3962 = vmatpush3.bf16.msra.mxu1 %v4424_v50  ;;  %v2447_v39 = vpack.c.bf16 %v2444_v1, %v2442_v57 }
 0x15c   : > { %3955 = vmatprep.subr.bf16.mxu1 %v4425_v22 }
 0x15f   : > { %3963 = vmatpush3.bf16.msra.mxu1 %v4425_v22 }
 0x160   : > { %3956 = vmatprep.subr.bf16.mxu1 %v4426_v45 }
 0x161   : > { %3689 = vmatmul.mubr.bf16.gmra.mrb[8].mxu1 %v4934_v10  ;;  %v4429_v10 = vld [vmem:[#allocation5 + $0x138] sm:$0xff]  }
 0x162   : > { %3897 = vmatmul.mubr.bf16.gmra.mrb[24].mxu0 %v5275_v32  ;;  %3692 = vmatprep.mubr.bf16.mxu1 %v4948_v30 }
 0x163   : > { %3900 = vmatprep.mubr.bf16.mxu0 %v5363_v41  ;;  %3964 = vmatpush3.bf16.msra.mxu1 %v4426_v45 }
 0x164   : > { %3957 = vmatprep.subr.bf16.mxu1 %v4427_v61 }
 0x167   : > { %3965 = vmatpush3.bf16.msra.mxu1 %v4427_v61 }
 0x168   : > { %3958 = vmatprep.subr.bf16.mxu1 %v4428_v52 }
 0x169   : > { %3693 = vmatmul.mubr.bf16.gmra.mrb[12].mxu1 %v4975_v63 }
 0x16a   : > { %3901 = vmatmul.mubr.bf16.gmra.mrb[28].mxu0 %v2447_v39  ;;  %3696 = vmatprep.mubr.bf16.mxu1 %v5000_v47 }
 0x16b   : > { %3920 = vmatprep.mubr.bf16.mxu0 %v5109_v42  ;;  %3966 = vmatpush3.bf16.msra.mxu1 %v4428_v52 }
 0x16c   : > { %3959 = vmatprep.subr.bf16.mxu1 %v4429_v10 }
 0x16f   : > { %3967 = vmatpush3.bf16.msra.mxu1 %v4429_v10 }
 0x171   : > { %3697 = vmatmul.mubr.bf16.gmra.mrb[16].mxu1 %v5006_v16 }
 0x172   : > { %3921 = vmatmul.mubr.bf16.vlgmr.msra.gmra.mrb[0].mxu0 %v5120_v34  ;;  %3700 = vmatprep.mubr.bf16.mxu1 %v5054_v43 }
 0x173   : > { %3924 = vmatprep.mubr.bf16.mxu0 %v5186_v5 }
 0x179   : > { %3701 = vmatmul.mubr.bf16.gmra.mrb[20].mxu1 %v5078_v7 }
 0x17a   : > { %3925 = vmatmul.mubr.bf16.gmra.mrb[4].mxu0 %v5194_v29  ;;  %3704 = vmatprep.mubr.bf16.mxu1 %v5105_v15 }
 0x17b   : > { %3928 = vmatprep.mubr.bf16.mxu0 %v5223_v55 }
 0x181   : > { %3705 = vmatmul.mubr.bf16.gmra.mrb[24].mxu1 %v5116_v53 }
 0x182   : > { %3929 = vmatmul.mubr.bf16.gmra.mrb[8].mxu0 %v5239_v49  ;;  %3708 = vmatprep.mubr.bf16.mxu1 %v5168_v24 }
 0x183   : > { %3932 = vmatprep.mubr.bf16.mxu0 %v5277_v13 }
 0x189   : > { %3709 = vmatmul.mubr.bf16.gmra.mrb[28].mxu1 %v5338_v27 }
 0x18a   : > { %3933 = vmatmul.mubr.bf16.gmra.mrb[12].mxu0 %v5279_v40  ;;  %3744 = vmatprep.mubr.bf16.mxu1 %v5733_v12  ;;  %v5508_v40 = vld [vmem:[#allocation7] ss:$0 sm:$0xff] }
 0x18b   : > { %3936 = vmatprep.mubr.bf16.mxu0 %v5295_v17 }
 0x191   : > { %3745 = vmatmul.mubr.bf16.vlgmr.msra.gmra.mrb[16].mxu1 %v5734_v35 }
 0x192   : > { %3937 = vmatmul.mubr.bf16.gmra.mrb[16].mxu0 %v5297_v58  ;;  %3748 = vmatprep.mubr.bf16.mxu1 %v5180_v21 }
 0x193   : > { %3940 = vmatprep.mubr.bf16.mxu0 %v5321_v46 }
 0x199   : > { %3749 = vmatmul.mubr.bf16.gmra.mrb[20].mxu1 %v5188_v23 }
 0x19a   : > { %3941 = vmatmul.mubr.bf16.gmra.mrb[20].mxu0 %v5327_v60  ;;  %3752 = vmatprep.mubr.bf16.mxu1 %v5215_v18 }
 0x19b   : > { %3944 = vmatprep.mubr.bf16.mxu0 %v5351_v9 }
 0x1a1   : > { %3753 = vmatmul.mubr.bf16.gmra.mrb[24].mxu1 %v5735_v14 }
 0x1a2   : > { %3945 = vmatmul.mubr.bf16.gmra.mrb[24].mxu0 %v5353_v6  ;;  %3756 = vmatprep.mubr.bf16.mxu1 %v5275_v32 }
 0x1a3   : > { %3948 = vmatprep.mubr.bf16.mxu0 %v5365_v2 }
 0x1a9   : > { %3757 = vmatmul.mubr.bf16.gmra.mrb[28].mxu1 %v5363_v41 }
 0x1aa   : > { %3949 = vmatmul.mubr.bf16.gmra.mrb[28].mxu0 %v2713_v51 }
 0x224   : > { %v3682_v16 = vpop.f32.mrb[0].mxu1 }
 0x225   : > { %v1484_v30 = vpop.f32.mrb[1].mxu1 }
 0x226   : > { %v3683_v34 = vpop.f32.mrb[2].mxu1 }
 0x227   : > { %v1487_v43 = vpop.f32.mrb[3].mxu1 }
 0x22c   : > { %v3686_v63 = vpop.f32.mrb[4].mxu1 }
 0x22d   : > { %v1500_v47 = vpop.f32.mrb[5].mxu1 }
 0x22e   : > { %v3687_v29 = vpop.f32.mrb[6].mxu1 }
 0x22f   : > { %v1503_v5 = vpop.f32.mrb[7].mxu1 }
 0x234   : > { %v3690_v7 = vpop.f32.mrb[8].mxu1 }
 0x235   : > { %v1516_v15 = vpop.f32.mrb[9].mxu1 }
 0x236   : > { %v3691_v42 = vpop.f32.mrb[10].mxu1 }
 0x237   : > { %v1519_v53 = vpop.f32.mrb[11].mxu1 }
 0x23c   : > { %v5500_v21 = vpop.f32.mrb[12].mxu1 }
 0x23d   : > { %v5502_v24 = vpop.f32.mrb[13].mxu1 }
 0x23e   : > { %v5504_v23 = vpop.f32.mrb[14].mxu1 }
 0x23f   : > { %v5506_v18 = vpop.f32.mrb[15].mxu1 }
 0x245   : > { %v3922_v55 = vpop.f32.mrb[0].mxu0 }
 0x246   : > { %v3968_v49 = vadd.f32 %v3922_v55, %v3682_v16  ;;  %v2813_v32 = vpop.f32.mrb[1].mxu0 }
 0x247   : > { %v3969_v13 = vadd.f32 %v2813_v32, %v1484_v30  ;;  %v3923_v17 = vpop.f32.mrb[2].mxu0 }
 0x248   : > { %v2981_v58 = vadd.f32 %v3968_v49, %v5508_v40  ;;  %v3970_v46 = vadd.f32 %v3923_v17, %v3683_v34  ;;  %v2816_v60 = vpop.f32.mrb[3].mxu0 }
 0x249   : > { %v2979_v27 = vadd.f32 %v3969_v13, %v5508_v40  ;;  %v3971_v9 = vadd.f32 %v2816_v60, %v1487_v43 }
 0x24a   : > { %v3013_v6 = vmax.f32 %v2981_v58, 0.0  ;;  %v2982_v41 = vadd.f32 %v3970_v46, %v5508_v40 }
 0x24b   : > { %v3011_v2 = vmax.f32 %v2979_v27, 0.0  ;;  %v2980_v31 = vadd.f32 %v3971_v9, %v5508_v40 }
 0x24c   : > { %3045 = vst [vmem:[%s5515_s22 + $0x10] sm:$0xff] %v3013_v6  ;;  %v3014_v26 = vmax.f32 %v2982_v41, 0.0 }
 0x24d   : > { %3043 = vst [vmem:[%s5515_s22] sm:$0xff] %v3011_v2  ;;  %v3012_v59 = vmax.f32 %v2980_v31, 0.0  ;;  %v3926_v19 = vpop.f32.mrb[4].mxu0 }
 0x24e   : > { %3046 = vst [vmem:[%s5515_s22 + $0x18] sm:$0xff] %v3014_v26  ;;  %v3972_v56 = vadd.f32 %v3926_v19, %v3686_v63  ;;  %v2829_v36 = vpop.f32.mrb[5].mxu0 }
 0x24f   : > { %3044 = vst [vmem:[%s5515_s22 + $0x8] sm:$0xff] %v3012_v59  ;;  %v3973_v0 = vadd.f32 %v2829_v36, %v1500_v47  ;;  %v3927_v44 = vpop.f32.mrb[6].mxu0 }
 0x250   : > { %v2985_v51 = vadd.f32 %v3972_v56, %v5508_v40  ;;  %v3974_v38 = vadd.f32 %v3927_v44, %v3687_v29  ;;  %v2832_v33 = vpop.f32.mrb[7].mxu0 }
 0x251   : > { %v2983_v20 = vadd.f32 %v3973_v0, %v5508_v40  ;;  %v3975_v8 = vadd.f32 %v2832_v33, %v1503_v5 }
 0x252   : > { %v3017_v25 = vmax.f32 %v2985_v51, 0.0  ;;  %v2986_v11 = vadd.f32 %v3974_v38, %v5508_v40 }
 0x253   : > { %v3015_v54 = vmax.f32 %v2983_v20, 0.0  ;;  %v2984_v4 = vadd.f32 %v3975_v8, %v5508_v40 }
 0x254   : > { %3049 = vst [vmem:[%s5515_s22 + $0x30] sm:$0xff] %v3017_v25  ;;  %v3018_v62 = vmax.f32 %v2986_v11, 0.0 }
 0x255   : > { %3047 = vst [vmem:[%s5515_s22 + $0x20] sm:$0xff] %v3015_v54  ;;  %v3016_v12 = vmax.f32 %v2984_v4, 0.0  ;;  %v3930_v35 = vpop.f32.mrb[8].mxu0 }
 0x256   : > { %3050 = vst [vmem:[%s5515_s22 + $0x38] sm:$0xff] %v3018_v62  ;;  %v3976_v28 = vadd.f32 %v3930_v35, %v3690_v7  ;;  %v2845_v50 = vpop.f32.mrb[9].mxu0 }
 0x257   : > { %3048 = vst [vmem:[%s5515_s22 + $0x28] sm:$0xff] %v3016_v12  ;;  %v3977_v14 = vadd.f32 %v2845_v50, %v1516_v15  ;;  %v3931_v22 = vpop.f32.mrb[10].mxu0 }
 0x258   : > { %v2989_v37 = vadd.f32 %v3976_v28, %v5508_v40  ;;  %v3978_v48 = vadd.f32 %v3931_v22, %v3691_v42  ;;  %v2848_v3 = vpop.f32.mrb[11].mxu0 }
 0x259   : > { %v2987_v45 = vadd.f32 %v3977_v14, %v5508_v40  ;;  %v3979_v57 = vadd.f32 %v2848_v3, %v1519_v53 }
 0x25a   : > { %v3021_v1 = vmax.f32 %v2989_v37, 0.0  ;;  %v2990_v61 = vadd.f32 %v3978_v48, %v5508_v40 }
 0x25b   : > { %v3019_v39 = vmax.f32 %v2987_v45, 0.0  ;;  %v2988_v52 = vadd.f32 %v3979_v57, %v5508_v40 }
 0x25c   : > { %3053 = vst [vmem:[%s5515_s22 + $0x50] sm:$0xff] %v3021_v1  ;;  %v3022_v10 = vmax.f32 %v2990_v61, 0.0 }
 0x25d   : > { %3051 = vst [vmem:[%s5515_s22 + $0x40] sm:$0xff] %v3019_v39  ;;  %v3020_v16 = vmax.f32 %v2988_v52, 0.0  ;;  %v3934_v30 = vpop.f32.mrb[12].mxu0 }
 0x25e   : > { %3054 = vst [vmem:[%s5515_s22 + $0x58] sm:$0xff] %v3022_v10  ;;  %v3980_v34 = vadd.f32 %v3934_v30, %v5500_v21  ;;  %v2861_v43 = vpop.f32.mrb[13].mxu0 }
 0x25f   : > { %3052 = vst [vmem:[%s5515_s22 + $0x48] sm:$0xff] %v3020_v16  ;;  %v3981_v63 = vadd.f32 %v2861_v43, %v5502_v24  ;;  %v3935_v47 = vpop.f32.mrb[14].mxu0 }
 0x260   : > { %v2993_v29 = vadd.f32 %v3980_v34, %v5508_v40  ;;  %v3982_v5 = vadd.f32 %v3935_v47, %v5504_v23  ;;  %v2864_v7 = vpop.f32.mrb[15].mxu0 }
 0x261   : > { %v2991_v15 = vadd.f32 %v3981_v63, %v5508_v40  ;;  %v3983_v42 = vadd.f32 %v2864_v7, %v5506_v18 }
 0x262   : > { %v3025_v53 = vmax.f32 %v2993_v29, 0.0  ;;  %v2994_v21 = vadd.f32 %v3982_v5, %v5508_v40 }
 0x263   : > { %v3023_v55 = vmax.f32 %v2991_v15, 0.0  ;;  %v2992_v49 = vadd.f32 %v3983_v42, %v5508_v40 }
 0x264   : > { %3057 = vst [vmem:[%s5515_s22 + $0x70] sm:$0xff] %v3025_v53  ;;  %v3026_v24 = vmax.f32 %v2994_v21, 0.0  ;;  %v3746_v32 = vpop.f32.mrb[16].mxu1 }
 0x265   : > { %3055 = vst [vmem:[%s5515_s22 + $0x60] sm:$0xff] %v3023_v55  ;;  %v3024_v13 = vmax.f32 %v2992_v49, 0.0  ;;  %v3938_v17 = vpop.f32.mrb[16].mxu0  ;;  %v1817_v58 = vpop.f32.mrb[17].mxu1 }
 0x266   : > { %3058 = vst [vmem:[%s5515_s22 + $0x78] sm:$0xff] %v3026_v24  ;;  %v3984_v23 = vadd.f32 %v3938_v17, %v3746_v32  ;;  %v2877_v46 = vpop.f32.mrb[17].mxu0  ;;  %v3747_v60 = vpop.f32.mrb[18].mxu1 }
 0x267   : > { %3056 = vst [vmem:[%s5515_s22 + $0x68] sm:$0xff] %v3024_v13  ;;  %v3985_v18 = vadd.f32 %v2877_v46, %v1817_v58  ;;  %v3939_v27 = vpop.f32.mrb[18].mxu0  ;;  %v1820_v9 = vpop.f32.mrb[19].mxu1 }
 0x268   : > { %v2997_v6 = vadd.f32 %v3984_v23, %v5508_v40  ;;  %v3986_v41 = vadd.f32 %v3939_v27, %v3747_v60  ;;  %v2880_v2 = vpop.f32.mrb[19].mxu0 }
 0x269   : > { %v2995_v31 = vadd.f32 %v3985_v18, %v5508_v40  ;;  %v3987_v26 = vadd.f32 %v2880_v2, %v1820_v9 }
 0x26a   : > { %v3029_v59 = vmax.f32 %v2997_v6, 0.0  ;;  %v2998_v19 = vadd.f32 %v3986_v41, %v5508_v40 }
 0x26b   : > { %v3027_v56 = vmax.f32 %v2995_v31, 0.0  ;;  %v2996_v36 = vadd.f32 %v3987_v26, %v5508_v40 }
 0x26c   : > { %3061 = vst [vmem:[%s5515_s22 + $0x90] sm:$0xff] %v3029_v59  ;;  %v3030_v0 = vmax.f32 %v2998_v19, 0.0  ;;  %v3750_v44 = vpop.f32.mrb[20].mxu1 }
 0x26d   : > { %3059 = vst [vmem:[%s5515_s22 + $0x80] sm:$0xff] %v3027_v56  ;;  %v3028_v51 = vmax.f32 %v2996_v36, 0.0  ;;  %v3942_v38 = vpop.f32.mrb[20].mxu0  ;;  %v1833_v33 = vpop.f32.mrb[21].mxu1 }
 0x26e   : > { %3062 = vst [vmem:[%s5515_s22 + $0x98] sm:$0xff] %v3030_v0  ;;  %v3988_v20 = vadd.f32 %v3942_v38, %v3750_v44  ;;  %v2893_v8 = vpop.f32.mrb[21].mxu0  ;;  %v3751_v25 = vpop.f32.mrb[22].mxu1 }
 0x26f   : > { %3060 = vst [vmem:[%s5515_s22 + $0x88] sm:$0xff] %v3028_v51  ;;  %v3989_v11 = vadd.f32 %v2893_v8, %v1833_v33  ;;  %v3943_v54 = vpop.f32.mrb[22].mxu0  ;;  %v1836_v4 = vpop.f32.mrb[23].mxu1 }
 0x270   : > { %v3001_v62 = vadd.f32 %v3988_v20, %v5508_v40  ;;  %v3990_v12 = vadd.f32 %v3943_v54, %v3751_v25  ;;  %v2896_v35 = vpop.f32.mrb[23].mxu0 }
 0x271   : > { %v2999_v28 = vadd.f32 %v3989_v11, %v5508_v40  ;;  %v3991_v50 = vadd.f32 %v2896_v35, %v1836_v4 }
 0x272   : > { %v3033_v14 = vmax.f32 %v3001_v62, 0.0  ;;  %v3002_v22 = vadd.f32 %v3990_v12, %v5508_v40 }
 0x273   : > { %v3031_v37 = vmax.f32 %v2999_v28, 0.0  ;;  %v3000_v48 = vadd.f32 %v3991_v50, %v5508_v40 }
 0x274   : > { %3065 = vst [vmem:[%s5515_s22 + $0xb0] sm:$0xff] %v3033_v14  ;;  %v3034_v3 = vmax.f32 %v3002_v22, 0.0  ;;  %v3754_v45 = vpop.f32.mrb[24].mxu1 }
 0x275   : > { %3063 = vst [vmem:[%s5515_s22 + $0xa0] sm:$0xff] %v3031_v37  ;;  %v3032_v57 = vmax.f32 %v3000_v48, 0.0  ;;  %v3946_v1 = vpop.f32.mrb[24].mxu0  ;;  %v1849_v61 = vpop.f32.mrb[25].mxu1 }
 0x276   : > { %3066 = vst [vmem:[%s5515_s22 + $0xb8] sm:$0xff] %v3034_v3  ;;  %v3992_v39 = vadd.f32 %v3946_v1, %v3754_v45  ;;  %v2909_v52 = vpop.f32.mrb[25].mxu0  ;;  %v3755_v10 = vpop.f32.mrb[26].mxu1 }
 0x277   : > { %3064 = vst [vmem:[%s5515_s22 + $0xa8] sm:$0xff] %v3032_v57  ;;  %v3993_v16 = vadd.f32 %v2909_v52, %v1849_v61  ;;  %v3947_v30 = vpop.f32.mrb[26].mxu0  ;;  %v1852_v34 = vpop.f32.mrb[27].mxu1 }
 0x278   : > { %v3005_v43 = vadd.f32 %v3992_v39, %v5508_v40  ;;  %v3994_v63 = vadd.f32 %v3947_v30, %v3755_v10  ;;  %v2912_v47 = vpop.f32.mrb[27].mxu0 }
 0x279   : > { %v3003_v29 = vadd.f32 %v3993_v16, %v5508_v40  ;;  %v3995_v5 = vadd.f32 %v2912_v47, %v1852_v34 }
 0x27a   : > { %v3037_v7 = vmax.f32 %v3005_v43, 0.0  ;;  %v3006_v15 = vadd.f32 %v3994_v63, %v5508_v40 }
 0x27b   : > { %v3035_v42 = vmax.f32 %v3003_v29, 0.0  ;;  %v3004_v53 = vadd.f32 %v3995_v5, %v5508_v40 }
 0x27c   : > { %3069 = vst [vmem:[%s5515_s22 + $0xd0] sm:$0xff] %v3037_v7  ;;  %v3038_v21 = vmax.f32 %v3006_v15, 0.0  ;;  %v3758_v55 = vpop.f32.mrb[28].mxu1 }
 0x27d   : > { %3067 = vst [vmem:[%s5515_s22 + $0xc0] sm:$0xff] %v3035_v42  ;;  %v3036_v49 = vmax.f32 %v3004_v53, 0.0  ;;  %v3950_v24 = vpop.f32.mrb[28].mxu0  ;;  %v1865_v32 = vpop.f32.mrb[29].mxu1 }
 0x27e   : > { %3070 = vst [vmem:[%s5515_s22 + $0xd8] sm:$0xff] %v3038_v21  ;;  %v3996_v13 = vadd.f32 %v3950_v24, %v3758_v55  ;;  %v2925_v17 = vpop.f32.mrb[29].mxu0  ;;  %v3759_v58 = vpop.f32.mrb[30].mxu1 }
 0x27f   : > { %3068 = vst [vmem:[%s5515_s22 + $0xc8] sm:$0xff] %v3036_v49  ;;  %v3997_v23 = vadd.f32 %v2925_v17, %v1865_v32  ;;  %v3951_v46 = vpop.f32.mrb[30].mxu0  ;;  %v1868_v60 = vpop.f32.mrb[31].mxu1 }
 0x280   : > { %v3009_v18 = vadd.f32 %v3996_v13, %v5508_v40  ;;  %v3998_v27 = vadd.f32 %v3951_v46, %v3759_v58  ;;  %v2928_v9 = vpop.f32.mrb[31].mxu0 }
 0x281   : > { %v3007_v6 = vadd.f32 %v3997_v23, %v5508_v40  ;;  %v3999_v41 = vadd.f32 %v2928_v9, %v1868_v60 }
 0x282   : > { %v3041_v2 = vmax.f32 %v3009_v18, 0.0  ;;  %v3010_v31 = vadd.f32 %v3998_v27, %v5508_v40 }
 0x283   : > { %v3039_v26 = vmax.f32 %v3007_v6, 0.0  ;;  %v3008_v59 = vadd.f32 %v3999_v41, %v5508_v40 }
 0x284   : > { %3073 = vst [vmem:[%s5515_s22 + $0xf0] sm:$0xff] %v3041_v2  ;;  %v3042_v19 = vmax.f32 %v3010_v31, 0.0 }
 0x285   : > { %3071 = vst [vmem:[%s5515_s22 + $0xe0] sm:$0xff] %v3039_v26  ;;  %v3040_v56 = vmax.f32 %v3008_v59, 0.0 }
 0x286   : > { %3074 = vst [vmem:[%s5515_s22 + $0xf8] sm:$0xff] %v3042_v19 }
 0x287   : > { %3072 = vst [vmem:[%s5515_s22 + $0xe8] sm:$0xff] %v3040_v56 }
 0x288   : > { %4529 = shalt.err (!%p4526_p2)
}
 0x289   : > { %s4530_s28 = scalar_lea.hbm %s5583_s26, 4096  ;;  %s4534_s8 = scalar_lea.hbm %s5640_s3, 8192 }
 0x28a   : > { %p4531_p0 = scmp.ne.s32.totalorder %s5583_s26, %s4530_s28  ;;  %p4535_p6 = scmp.lt.u32.totalorder %s5583_s26, %s5640_s3 }
 0x28b   : > { %p4536_p7 = scmp.lt.u32.totalorder %s4534_s8, %s4530_s28  ;;  %p4538_p8 = scmp.lt.u32.totalorder %s4530_s28, %s5583_s26 }
 0x28c   : > { %p4532_p4 = pnand %p4531_p0, %p5736_p12 }
 0x28d   : > { %p4537_p11 = por %p4536_p7, %p4535_p6 }
 0x28e   : > { %p4533_p13 = pneg %p4532_p4 }
 0x28f   : > { %p4539_p1 = por %p4538_p8, %p4537_p11 }
 0x291   : > { %p4540_p10 = pnand %p4539_p1, %p4533_p13 }
 0x293   : > { %4543 = shalt.err (!%p4540_p10)
}
 0x294   : > { %s4610_s22 = smov 128   ;;  %s4611_s24 = smov 8  }
 0x295   : > { %4237 = dma.vmem_to_hbm [thread:$0]  (%p5736_p12), %s5585_s11, 4096, %s5583_s26, %s3076_s15, %s4610_s22, %s4610_s22, %s4611_s24  }
 0x296 PF: > { %s3105_s18 = sand.u32 1, %s4582_s12   ;;  %p5737_p3 = scmp.ne.s32.totalorder %s5686_s23, 0 }
 0x297   : > { %p5738_p5 = scmp.ge.s32.totalorder %s4602_s17, 2  ;;  %s3106_s5 = scalar_lea.sflag [#allocation4], %s3105_s18 }
 0x299   : > { %p4251_p9 = pnand %p5738_p5, %p5737_p3 }
 0x29b   : > { %4577 = dma.done.wait (!%p4251_p9), %s3106_s5, 4096  }
 0x29c   : > { %4579 = vsyncadd (!%p4251_p9), %s3106_s5, 4294963200  ;;  %s20_s17 = sadd.s32 1, %s4602_s17   ;;  %s5739_s12 = smov %s4586_s13 }
 0x29d   : > { %p17_p2 = scmp.ge.s32.totalorder %s20_s17, 4   ;;  %s5740_s13 = smov %s4590_s14 }
 0x29e   : > { %s5741_s14 = smov %s4781_s6  ;;  %s5742_s15 = smov %s4598_s16 }
 0x29f   : > { %s5743_s16 = smov %s5745_s25  ;;  %19 = sbr.rel (!%p17_p2) target bundleno = 7 (0x7), region = 95 }
 0x2a6   :  { %3111 = vsyncpa [#allocation3], 1 }
 0x2a7   :  { %3113 = vsyncpa [#allocation3 + $0x1], 1 }
 0x2a8   :  { %3114 = vsyncpa [#allocation6], 1 }
 0x2a9   :  { %3115 = vsyncpa [#allocation4], 1 }
 0x2aa   :  { %3117 = vsyncpa [#allocation4 + $0x1], 1 }

</bundles_post_ra>
